<compile_context>
chip_gen: v5e
topology: v5e:2x2
jax: 0.10.0
libtpu: 0.0.40
codegen_flags: <defaults>
</compile_context>

<pallas_src>
import functools
import math

import jax
import jax.numpy as jnp
from jax.experimental import pallas as pl
from jax.experimental.pallas import tpu as pltpu


# ----------------------------------------------------------------------------
# Fused decoder-layer kernel (one grid step == one batch element)
# ----------------------------------------------------------------------------
def _decoder_layer_kernel(
    tgt_ref, mem_ref, ln_ref,
    wqkv_s_ref, bqkv_s_ref, kvbias_s_ref, wo_s_ref, bo_s_ref,
    wq_c_ref, bq_c_ref, wkv_c_ref, bkv_c_ref, kvbias_c_ref, wo_c_ref, bo_c_ref,
    w1_ref, b1_ref, w2_ref, b2_ref,
    out_ref, selfw_ref, srcw_ref,
    o_heads_ref,
    *, nhead, eps):
    _, T, D = tgt_ref.shape
    hd = D // nhead
    inv_nhead = 1.0 / nhead

    x = tgt_ref[0].astype(jnp.float32)        # (T, D) resident in VMEM/vregs
    mem = mem_ref[0].astype(jnp.float32)      # (S, D)

    def layer_norm(v, idx):
        g = ln_ref[2 * idx:2 * idx + 1, :]            # (1, D)
        b = ln_ref[2 * idx + 1:2 * idx + 2, :]        # (1, D)
        mu = jnp.mean(v, axis=-1, keepdims=True)
        var = jnp.mean(jnp.square(v - mu), axis=-1, keepdims=True)
        return (v - mu) * jax.lax.rsqrt(var + eps) * g + b

    def dense(a_bf, w_ref, b_ref):
        # bf16 MXU matmul with f32 accumulation, f32 bias add
        return jnp.dot(a_bf, w_ref[...],
                       preferred_element_type=jnp.float32) + b_ref[...]

    def attention_block(q, k, v, kvbias_ref, wo_ref, bo_ref, w_out_ref):
        # q: (T, D) f32 (1/sqrt(hd) already folded into Wq), k/v: (Skv, D) f32.
        # bias_k / bias_v are treated as a rank-1 extra softmax column so all
        # matmul operands and (T, Skv) score matrices stay lane-dense.
        Skv = k.shape[0]
        q_bf = q.astype(jnp.bfloat16)                 # cast once, not per head
        k_bf = k.astype(jnp.bfloat16)
        v_bf = v.astype(jnp.bfloat16)
        bk = kvbias_ref[0:1, :]                       # (1, D) f32
        bv = kvbias_ref[1:2, :]                       # (1, D) f32
        w_main = jnp.zeros((T, Skv), jnp.float32)
        w_bias = jnp.zeros((T, 1), jnp.float32)
        for h in range(nhead):                        # static unroll (small nhead)
            lo, hi = h * hd, (h + 1) * hd
            s = jax.lax.dot_general(                  # (T, Skv) f32, lane-dense
                q_bf[:, lo:hi], k_bf[:, lo:hi], (((1,), (1,)), ((), ())),
                preferred_element_type=jnp.float32)
            s_b = jnp.sum(q[:, lo:hi] * bk[:, lo:hi],
                          axis=-1, keepdims=True)     # (T, 1) bias-key score
            m = jnp.maximum(jnp.max(s, axis=-1, keepdims=True), s_b)
            e = jnp.exp(s - m)
            e_b = jnp.exp(s_b - m)
            inv = 1.0 / (jnp.sum(e, axis=-1, keepdims=True) + e_b)  # exact
            p = e * inv
            p_b = e_b * inv
            o_h = jnp.dot(p.astype(jnp.bfloat16), v_bf[:, lo:hi],
                          preferred_element_type=jnp.float32) + p_b * bv[:, lo:hi]
            # head output lands in its lane slice of the shared bf16 scratch
            o_heads_ref[:, lo:hi] = o_h.astype(jnp.bfloat16)
            w_main = w_main + p
            w_bias = w_bias + p_b
        # single full-depth out-projection over all heads (one (T,D)@(D,D) dot)
        attn = dense(o_heads_ref[...], wo_ref, bo_ref)
        # head-averaged attention weights; bias column written separately
        w_out_ref[0, :, 0:Skv] = (w_main * inv_nhead).astype(w_out_ref.dtype)
        w_out_ref[0, :, Skv:Skv + 1] = (w_bias * inv_nhead).astype(w_out_ref.dtype)
        return attn

    # ---- self-attention block (fused LN + QKV projection) -------------------
    t2 = layer_norm(x, 0).astype(jnp.bfloat16)
    qkv = dense(t2, wqkv_s_ref, bqkv_s_ref)                          # (T, 3D)
    sa = attention_block(qkv[:, :D], qkv[:, D:2 * D], qkv[:, 2 * D:],
                         kvbias_s_ref, wo_s_ref, bo_s_ref, selfw_ref)
    x = x + sa                                                       # residual

    # ---- cross-attention block (fused LN + Q; fused KV from memory) ---------
    t2 = layer_norm(x, 1).astype(jnp.bfloat16)
    q = dense(t2, wq_c_ref, bq_c_ref)                                # (T, D)
    kv = dense(mem.astype(jnp.bfloat16), wkv_c_ref, bkv_c_ref)       # (S, 2D)
    ca = attention_block(q, kv[:, :D], kv[:, D:],
                         kvbias_c_ref, wo_c_ref, bo_c_ref, srcw_ref)
    x = x + ca

    # ---- feed-forward block (linear1 + relu + linear2, no HBM intermediate) -
    t2 = layer_norm(x, 2).astype(jnp.bfloat16)
    hid = jnp.maximum(dense(t2, w1_ref, b1_ref), 0.0)
    x = x + dense(hid.astype(jnp.bfloat16), w2_ref, b2_ref)

    # ---- final norm ----------------------------------------------------------
    out_ref[0] = layer_norm(x, 3).astype(out_ref.dtype)


# ----------------------------------------------------------------------------
# Parameter packing: pre-transpose to (K, N), fuse QKV / KV, fold 1/sqrt(hd)
# into Wq / bq, cast weights bf16 once.
# ----------------------------------------------------------------------------
PARAM_ORDER = ("ln", "wqkv_s", "bqkv_s", "kvbias_s", "wo_s", "bo_s",
               "wq_c", "bq_c", "wkv_c", "bkv_c", "kvbias_c", "wo_c", "bo_c",
               "w1", "b1", "w2", "b2")


def pack_params(p, nhead):
    bf16 = lambda w: w.astype(jnp.bfloat16)
    row = lambda a: a.reshape(1, -1).astype(jnp.float32)

    sa, ca = p["self_attn"], p["cross_attn"]
    D = p["norm1_g"].shape[0]
    scale = 1.0 / math.sqrt(D // nhead)

    Wq_s, Wk_s, Wv_s = jnp.split(sa["in_proj_weight"], 3, axis=0)
    Wq_c, Wk_c, Wv_c = jnp.split(ca["in_proj_weight"], 3, axis=0)
    bqkv_s = jnp.concatenate([sa["in_proj_bias"][:D] * scale,
                              sa["in_proj_bias"][D:]])

    return dict(
        ln=jnp.stack([p["norm1_g"], p["norm1_b"], p["norm2_g"], p["norm2_b"],
                      p["norm3_g"], p["norm3_b"], p["norm4_g"], p["norm4_b"]],
                     axis=0).astype(jnp.float32),                        # (8, D)
        # self-attention: fused QKV weight (K,N) layout, softmax scale folded in
        wqkv_s=bf16(jnp.concatenate([Wq_s.T * scale, Wk_s.T, Wv_s.T], axis=1)),
        bqkv_s=row(bqkv_s),                                              # (1, 3D)
        kvbias_s=jnp.concatenate([sa["bias_k"].reshape(1, -1),
                                  sa["bias_v"].reshape(1, -1)],
                                 axis=0).astype(jnp.float32),            # (2, D)
        wo_s=bf16(sa["out_proj_weight"].T),                              # (D, D)
        bo_s=row(sa["out_proj_bias"]),
        # cross-attention: Q from normed x (scale folded), fused KV from memory
        wq_c=bf16(Wq_c.T * scale),                                       # (D, D)
        bq_c=row(ca["in_proj_bias"][:D] * scale),
        wkv_c=bf16(jnp.concatenate([Wk_c.T, Wv_c.T], axis=1)),           # (D, 2D)
        bkv_c=row(ca["in_proj_bias"][D:]),
        kvbias_c=jnp.concatenate([ca["bias_k"].reshape(1, -1),
                                  ca["bias_v"].reshape(1, -1)],
                                 axis=0).astype(jnp.float32),
        wo_c=bf16(ca["out_proj_weight"].T),
        bo_c=row(ca["out_proj_bias"]),
        # FFN
        w1=bf16(p["linear1_w"].T),                                       # (D, FF)
        b1=row(p["linear1_b"]),
        w2=bf16(p["linear2_w"].T),                                       # (FF, D)
        b2=row(p["linear2_b"]),
    )


# ----------------------------------------------------------------------------
# Single-buffered weight specs (probe once; fall back if unsupported)
# ----------------------------------------------------------------------------
@functools.lru_cache(maxsize=1)
def _single_buffered_weights_supported():
    try:
        def _k(x_ref, o_ref):
            o_ref[...] = x_ref[...] + 1.0
        spec = pl.BlockSpec((8, 128), lambda i: (0, 0),
                            pipeline_mode=pl.Buffered(1))
        x = jnp.zeros((8, 128), jnp.float32)
        out = pl.pallas_call(
            _k, grid=(2,),
            out_shape=jax.ShapeDtypeStruct((8, 128), jnp.float32),
            in_specs=[spec],
            out_specs=pl.BlockSpec((8, 128), lambda i: (0, 0)),
        )(x)
        jax.block_until_ready(out)
        return True
    except Exception:
        return False


def _weight_spec(arr, single_buffered):
    shape = tuple(arr.shape)
    zeros = (0,) * len(shape)
    idx = lambda b, _z=zeros: _z          # constant index map: fetched once
    if single_buffered:
        # weights never change across the grid -> double-buffering is pure waste
        return pl.BlockSpec(shape, idx, pipeline_mode=pl.Buffered(1))
    return pl.BlockSpec(shape, idx)


# ----------------------------------------------------------------------------
# Wrapper: one pallas_call for the whole decoder layer
# ----------------------------------------------------------------------------
def miso_decoder_layer(tgt, memory, packed, nhead, eps=1e-5):
    T, B, D = tgt.shape
    S = memory.shape[0]
    FF = packed["w1"].shape[1]

    # TODO(synk): the boundary transposes could be dropped when the caller works
    # batch-major (or fused into the input fetch via allow_input_fusion).
    tgt_bm = jnp.transpose(tgt, (1, 0, 2))        # (B, T, D)
    mem_bm = jnp.transpose(memory, (1, 0, 2))     # (B, S, D)

    weights = tuple(packed[k] for k in PARAM_ORDER)
    single_buf = _single_buffered_weights_supported()

    in_specs = [
        pl.BlockSpec((1, T, D), lambda b: (b, 0, 0)),
        pl.BlockSpec((1, S, D), lambda b: (b, 0, 0)),
    ] + [_weight_spec(w, single_buf) for w in weights]

    out_shape = (
        jax.ShapeDtypeStruct((B, T, D), jnp.float32),
        jax.ShapeDtypeStruct((B, T, T + 1), jnp.float32),
        jax.ShapeDtypeStruct((B, T, S + 1), jnp.float32),
    )
    out_specs = (
        pl.BlockSpec((1, T, D), lambda b: (b, 0, 0)),
        pl.BlockSpec((1, T, T + 1), lambda b: (b, 0, 0)),
        pl.BlockSpec((1, T, S + 1), lambda b: (b, 0, 0)),
    )

    # Explicit VMEM budget from the actual footprint, clamped to the device.
    weight_bytes = sum(int(w.size) * w.dtype.itemsize for w in weights)
    weight_bytes *= 1 if single_buf else 2
    act_bytes = 4 * (8 * T * D + 3 * S * D + 3 * T * D + 2 * S * D
                     + 2 * T * FF + 3 * T * (T + 1) + 3 * T * (S + 1))
    io_bytes = 2 * 4 * (2 * T * D + S * D + T * (T + 1) + T * (S + 1))
    try:
        vmem_cap = int(pltpu.get_tpu_info().vmem_capacity_bytes)
    except Exception:
        vmem_cap = 64 * 1024 * 1024
    vmem_limit = int(min(max(weight_bytes + act_bytes + io_bytes + (4 << 20),
                             32 << 20),
                         min(int(0.85 * vmem_cap), 100 << 20)))

    flops_per_b = (2 * T * D * 3 * D + 4 * T * T * D + 2 * T * D * D     # self
                   + 2 * T * D * D + 4 * S * D * D + 4 * T * S * D       # cross
                   + 2 * T * D * D
                   + 4 * T * D * FF)                                     # FFN
    transc_per_b = nhead * T * (T + S + 2) + 8 * T
    bytes_accessed = (4 * B * (2 * T * D + S * D + T * (T + 1) + T * (S + 1))
                      + sum(int(w.size) * w.dtype.itemsize for w in weights))
    cost = pl.CostEstimate(flops=int(B * flops_per_b),
                           transcendentals=int(B * transc_per_b),
                           bytes_accessed=int(bytes_accessed))

    # TODO(synk): for B==1 on v7x (2 TensorCores) add a second "parallel" grid
    # axis over T tiles; for very large d_model/dim_feedforward stream the FFN
    # and QKV weights in column blocks (pltpu.emit_pipeline) instead of holding
    # them fully resident.
    out_bm, self_w, src_w = pl.pallas_call(
        functools.partial(_decoder_layer_kernel, nhead=nhead, eps=eps),
        grid=(B,),
        out_shape=out_shape,
        in_specs=in_specs,
        out_specs=out_specs,
        scratch_shapes=[pltpu.VMEM((T, D), jnp.bfloat16)],   # per-head outputs
        compiler_params=pltpu.CompilerParams(
            dimension_semantics=("parallel",),
            vmem_limit_bytes=vmem_limit),
        cost_estimate=cost,
    )(tgt_bm, mem_bm, *weights)

    return jnp.transpose(out_bm, (1, 0, 2)), self_w, src_w


# ----------------------------------------------------------------------------
# Deterministic parameter init (shapes from module __init__, std rules mimic
# _get_std_from_tensor with init_scale=256; biases set to 0 as in the module)
# ----------------------------------------------------------------------------
def init_params(key, d_model, dim_ff, init_scale=256):
    keys = iter(jax.random.split(key, 16))

    def std_of(shape):
        if len(shape) > 2:
            in_d = shape[0] * shape[1]
            out_d = shape[2]
        else:
            in_d, out_d = shape
        return (2.0 / (in_d + init_scale * out_d)) ** 0.5

    def normal(shape, std):
        return std * jax.random.normal(next(keys), shape, jnp.float32)

    def attn_params():
        return dict(
            in_proj_weight=normal((3 * d_model, d_model),
                                  (2.0 / (4 * d_model)) ** 0.5),
            in_proj_bias=jnp.zeros((3 * d_model,), jnp.float32),
            bias_k=normal((1, 1, d_model), std_of((1, 1, d_model))),
            bias_v=normal((1, 1, d_model), std_of((1, 1, d_model))),
            out_proj_weight=normal((d_model, d_model),
                                   std_of((d_model, d_model))),
            out_proj_bias=jnp.zeros((d_model,), jnp.float32),
        )

    params = dict(
        self_attn=attn_params(),
        cross_attn=attn_params(),
        linear1_w=normal((dim_ff, d_model), std_of((dim_ff, d_model))),
        linear1_b=jnp.zeros((dim_ff,), jnp.float32),
        linear2_w=normal((d_model, dim_ff), std_of((d_model, dim_ff))),
        linear2_b=jnp.zeros((d_model,), jnp.float32),
    )
    for i in (1, 2, 3, 4):
        params[f"norm{i}_g"] = jnp.ones((d_model,), jnp.float32)
        params[f"norm{i}_b"] = jnp.zeros((d_model,), jnp.float32)
    return params


# ----------------------------------------------------------------------------
if __name__ == "__main__":
    # TODO(synk): training-mode dropout (dropout/dropout1-3) is not modeled;
    # this is the eval-mode forward (dropout == identity), matching inference.
    T, S, B, D, NHEAD, FF = 8, 8, 2, 32, 4, 64

    key = jax.random.PRNGKey(0)
    kp, kt, km = jax.random.split(key, 3)
    params = init_params(kp, D, FF)
    packed = pack_params(params, NHEAD)
    tgt = jax.random.normal(kt, (T, B, D), jnp.float32)
    memory = jax.random.normal(km, (S, B, D), jnp.float32)

    fwd = jax.jit(functools.partial(miso_decoder_layer, nhead=NHEAD))
    out, self_w, src_w = fwd(tgt, memory, packed)
    jax.block_until_ready((out, self_w, src_w))

    assert out.shape == (T, B, D)
    assert self_w.shape == (B, T, T + 1)       # +1 column from bias_k/bias_v
    assert src_w.shape == (B, T, S + 1)
    assert bool(jnp.all(jnp.isfinite(out)))
    # attention rows must sum to 1 (exact softmax normalization; bf16 scores)
    assert jnp.allclose(jnp.sum(self_w, axis=-1), 1.0, atol=2e-3)
    assert jnp.allclose(jnp.sum(src_w, axis=-1), 1.0, atol=2e-3)

    print("KERNEL_OK")
</pallas_src>

<mosaic_0001>
module attributes {stable_mosaic.version = 11 : i64} {
  func.func @_decoder_layer_kernel(%arg0: i32, %arg1: memref<1x8x32xf32, #tpu.memory_space<vmem>>, %arg2: memref<1x8x32xf32, #tpu.memory_space<vmem>>, %arg3: memref<8x32xf32, #tpu.memory_space<vmem>>, %arg4: memref<32x96xbf16, #tpu.memory_space<vmem>>, %arg5: memref<1x96xf32, #tpu.memory_space<vmem>>, %arg6: memref<2x32xf32, #tpu.memory_space<vmem>>, %arg7: memref<32x32xbf16, #tpu.memory_space<vmem>>, %arg8: memref<1x32xf32, #tpu.memory_space<vmem>>, %arg9: memref<32x32xbf16, #tpu.memory_space<vmem>>, %arg10: memref<1x32xf32, #tpu.memory_space<vmem>>, %arg11: memref<32x64xbf16, #tpu.memory_space<vmem>>, %arg12: memref<1x64xf32, #tpu.memory_space<vmem>>, %arg13: memref<2x32xf32, #tpu.memory_space<vmem>>, %arg14: memref<32x32xbf16, #tpu.memory_space<vmem>>, %arg15: memref<1x32xf32, #tpu.memory_space<vmem>>, %arg16: memref<32x64xbf16, #tpu.memory_space<vmem>>, %arg17: memref<1x64xf32, #tpu.memory_space<vmem>>, %arg18: memref<64x32xbf16, #tpu.memory_space<vmem>>, %arg19: memref<1x32xf32, #tpu.memory_space<vmem>>, %arg20: memref<1x8x32xf32, #tpu.memory_space<vmem>>, %arg21: memref<1x8x9xf32, #tpu.memory_space<vmem>>, %arg22: memref<1x8x9xf32, #tpu.memory_space<vmem>>, %arg23: memref<8x32xbf16, #tpu.memory_space<vmem>>) attributes {dimension_semantics = [#tpu.dimension_semantics<parallel>], iteration_bounds = array<i64: 2>, scalar_prefetch = 0 : i64, scratch_operands = 1 : i64, tpu.core_type = #tpu.core_type<tc>, window_params = [{transform_indices = @transform_0, window_bounds = array<i64: 1, 8, 32>}, {transform_indices = @transform_1, window_bounds = array<i64: 1, 8, 32>}, {pipeline_mode = #tpu.pipeline_mode<synchronous>, transform_indices = @transform_2, window_bounds = array<i64: 8, 32>}, {pipeline_mode = #tpu.pipeline_mode<synchronous>, transform_indices = @transform_3, window_bounds = array<i64: 32, 96>}, {pipeline_mode = #tpu.pipeline_mode<synchronous>, transform_indices = @transform_4, window_bounds = array<i64: 1, 96>}, {pipeline_mode = #tpu.pipeline_mode<synchronous>, transform_indices = @transform_5, window_bounds = array<i64: 2, 32>}, {pipeline_mode = #tpu.pipeline_mode<synchronous>, transform_indices = @transform_6, window_bounds = array<i64: 32, 32>}, {pipeline_mode = #tpu.pipeline_mode<synchronous>, transform_indices = @transform_7, window_bounds = array<i64: 1, 32>}, {pipeline_mode = #tpu.pipeline_mode<synchronous>, transform_indices = @transform_8, window_bounds = array<i64: 32, 32>}, {pipeline_mode = #tpu.pipeline_mode<synchronous>, transform_indices = @transform_9, window_bounds = array<i64: 1, 32>}, {pipeline_mode = #tpu.pipeline_mode<synchronous>, transform_indices = @transform_10, window_bounds = array<i64: 32, 64>}, {pipeline_mode = #tpu.pipeline_mode<synchronous>, transform_indices = @transform_11, window_bounds = array<i64: 1, 64>}, {pipeline_mode = #tpu.pipeline_mode<synchronous>, transform_indices = @transform_12, window_bounds = array<i64: 2, 32>}, {pipeline_mode = #tpu.pipeline_mode<synchronous>, transform_indices = @transform_13, window_bounds = array<i64: 32, 32>}, {pipeline_mode = #tpu.pipeline_mode<synchronous>, transform_indices = @transform_14, window_bounds = array<i64: 1, 32>}, {pipeline_mode = #tpu.pipeline_mode<synchronous>, transform_indices = @transform_15, window_bounds = array<i64: 32, 64>}, {pipeline_mode = #tpu.pipeline_mode<synchronous>, transform_indices = @transform_16, window_bounds = array<i64: 1, 64>}, {pipeline_mode = #tpu.pipeline_mode<synchronous>, transform_indices = @transform_17, window_bounds = array<i64: 64, 32>}, {pipeline_mode = #tpu.pipeline_mode<synchronous>, transform_indices = @transform_18, window_bounds = array<i64: 1, 32>}, {transform_indices = @transform_19, window_bounds = array<i64: 1, 8, 32>}, {transform_indices = @transform_20, window_bounds = array<i64: 1, 8, 9>}, {transform_indices = @transform_21, window_bounds = array<i64: 1, 8, 9>}]} {
    %c0 = arith.constant 0 : index
    %c0_0 = arith.constant 0 : index
    %c0_1 = arith.constant 0 : index
    %0 = vector.load %arg1[%c0, %c0_0, %c0_1] : memref<1x8x32xf32, #tpu.memory_space<vmem>>, vector<1x8x32xf32>
    %1 = vector.shape_cast %0 : vector<1x8x32xf32> to vector<8x32xf32>
    %c0_2 = arith.constant 0 : index
    %c0_3 = arith.constant 0 : index
    %c0_4 = arith.constant 0 : index
    %2 = vector.load %arg2[%c0_2, %c0_3, %c0_4] : memref<1x8x32xf32, #tpu.memory_space<vmem>>, vector<1x8x32xf32>
    %3 = vector.shape_cast %2 : vector<1x8x32xf32> to vector<8x32xf32>
    %c0_5 = arith.constant 0 : index
    %c0_6 = arith.constant 0 : index
    %4 = vector.load %arg3[%c0_5, %c0_6] : memref<8x32xf32, #tpu.memory_space<vmem>>, vector<1x32xf32>
    %c1 = arith.constant 1 : index
    %c0_7 = arith.constant 0 : index
    %5 = vector.load %arg3[%c1, %c0_7] : memref<8x32xf32, #tpu.memory_space<vmem>>, vector<1x32xf32>
    %cst = arith.constant dense<0.000000e+00> : vector<8xf32>
    %6 = vector.multi_reduction <add>, %1, %cst [1] : vector<8x32xf32> to vector<8xf32>
    %7 = vector.shape_cast %6 : vector<8xf32> to vector<8x1xf32>
    %cst_8 = arith.constant 3.200000e+01 : f32
    %8 = vector.broadcast %cst_8 : f32 to vector<8x1xf32>
    %9 = arith.divf %7, %8 : vector<8x1xf32>
    %10 = vector.broadcast %9 : vector<8x1xf32> to vector<8x32xf32>
    %11 = arith.subf %1, %10 : vector<8x32xf32>
    %12 = arith.mulf %11, %11 : vector<8x32xf32>
    %cst_9 = arith.constant dense<0.000000e+00> : vector<8xf32>
    %13 = vector.multi_reduction <add>, %12, %cst_9 [1] : vector<8x32xf32> to vector<8xf32>
    %14 = vector.shape_cast %13 : vector<8xf32> to vector<8x1xf32>
    %cst_10 = arith.constant 3.200000e+01 : f32
    %15 = vector.broadcast %cst_10 : f32 to vector<8x1xf32>
    %16 = arith.divf %14, %15 : vector<8x1xf32>
    %17 = vector.broadcast %9 : vector<8x1xf32> to vector<8x32xf32>
    %18 = arith.subf %1, %17 : vector<8x32xf32>
    %cst_11 = arith.constant 9.99999974E-6 : f32
    %19 = vector.broadcast %cst_11 : f32 to vector<8x1xf32>
    %20 = arith.addf %16, %19 : vector<8x1xf32>
    %21 = math.rsqrt %20 : vector<8x1xf32>
    %22 = vector.broadcast %21 : vector<8x1xf32> to vector<8x32xf32>
    %23 = arith.mulf %18, %22 : vector<8x32xf32>
    %24 = vector.broadcast %4 : vector<1x32xf32> to vector<8x32xf32>
    %25 = arith.mulf %23, %24 : vector<8x32xf32>
    %26 = vector.broadcast %5 : vector<1x32xf32> to vector<8x32xf32>
    %27 = arith.addf %25, %26 : vector<8x32xf32>
    %28 = arith.truncf %27 : vector<8x32xf32> to vector<8x32xbf16>
    %c0_12 = arith.constant 0 : index
    %c0_13 = arith.constant 0 : index
    %29 = vector.load %arg4[%c0_12, %c0_13] : memref<32x96xbf16, #tpu.memory_space<vmem>>, vector<32x96xbf16>
    %cst_14 = arith.constant dense<0.000000e+00> : vector<8x96xf32>
    %30 = tpu.matmul %28, %29, %cst_14 {dimension_numbers = #tpu.dot_dimension_numbers<[1], [0], [0], [1], [0, 0, 1, 1], [], []>} : vector<8x32xbf16>, vector<32x96xbf16>, vector<8x96xf32> -> vector<8x96xf32>
    %c0_15 = arith.constant 0 : index
    %c0_16 = arith.constant 0 : index
    %31 = vector.load %arg5[%c0_15, %c0_16] : memref<1x96xf32, #tpu.memory_space<vmem>>, vector<1x96xf32>
    %32 = vector.broadcast %31 : vector<1x96xf32> to vector<8x96xf32>
    %33 = arith.addf %30, %32 : vector<8x96xf32>
    %34 = vector.extract_strided_slice %33 {offsets = [0, 0], sizes = [8, 32], strides = [1, 1]} : vector<8x96xf32> to vector<8x32xf32>
    %35 = vector.extract_strided_slice %33 {offsets = [0, 32], sizes = [8, 32], strides = [1, 1]} : vector<8x96xf32> to vector<8x32xf32>
    %36 = vector.extract_strided_slice %33 {offsets = [0, 64], sizes = [8, 32], strides = [1, 1]} : vector<8x96xf32> to vector<8x32xf32>
    %37 = arith.truncf %34 : vector<8x32xf32> to vector<8x32xbf16>
    %38 = arith.truncf %35 : vector<8x32xf32> to vector<8x32xbf16>
    %39 = arith.truncf %36 : vector<8x32xf32> to vector<8x32xbf16>
    %c0_17 = arith.constant 0 : index
    %c0_18 = arith.constant 0 : index
    %40 = vector.load %arg6[%c0_17, %c0_18] : memref<2x32xf32, #tpu.memory_space<vmem>>, vector<1x32xf32>
    %c1_19 = arith.constant 1 : index
    %c0_20 = arith.constant 0 : index
    %41 = vector.load %arg6[%c1_19, %c0_20] : memref<2x32xf32, #tpu.memory_space<vmem>>, vector<1x32xf32>
    %cst_21 = arith.constant 0.000000e+00 : f32
    %42 = vector.broadcast %cst_21 : f32 to vector<8x8xf32>
    %cst_22 = arith.constant 0.000000e+00 : f32
    %43 = vector.broadcast %cst_22 : f32 to vector<8x1xf32>
    %44 = vector.extract_strided_slice %37 {offsets = [0, 0], sizes = [8, 8], strides = [1, 1]} : vector<8x32xbf16> to vector<8x8xbf16>
    %45 = vector.extract_strided_slice %38 {offsets = [0, 0], sizes = [8, 8], strides = [1, 1]} : vector<8x32xbf16> to vector<8x8xbf16>
    %cst_23 = arith.constant dense<0.000000e+00> : vector<8x8xf32>
    %46 = tpu.matmul %44, %45, %cst_23 {dimension_numbers = #tpu.dot_dimension_numbers<[1], [1], [0], [0], [0, 0, 1, 0], [], []>} : vector<8x8xbf16>, vector<8x8xbf16>, vector<8x8xf32> -> vector<8x8xf32>
    %47 = vector.extract_strided_slice %34 {offsets = [0, 0], sizes = [8, 8], strides = [1, 1]} : vector<8x32xf32> to vector<8x8xf32>
    %48 = vector.extract_strided_slice %40 {offsets = [0, 0], sizes = [1, 8], strides = [1, 1]} : vector<1x32xf32> to vector<1x8xf32>
    %49 = vector.broadcast %48 : vector<1x8xf32> to vector<8x8xf32>
    %50 = arith.mulf %47, %49 : vector<8x8xf32>
    %cst_24 = arith.constant dense<0.000000e+00> : vector<8xf32>
    %51 = vector.multi_reduction <add>, %50, %cst_24 [1] : vector<8x8xf32> to vector<8xf32>
    %52 = vector.shape_cast %51 : vector<8xf32> to vector<8x1xf32>
    %cst_25 = arith.constant dense<0xFF800000> : vector<8xf32>
    %53 = vector.multi_reduction <maximumf>, %46, %cst_25 [1] : vector<8x8xf32> to vector<8xf32>
    %54 = vector.shape_cast %53 : vector<8xf32> to vector<8x1xf32>
    %55 = arith.maximumf %54, %52 : vector<8x1xf32>
    %56 = vector.broadcast %55 : vector<8x1xf32> to vector<8x8xf32>
    %57 = arith.subf %46, %56 : vector<8x8xf32>
    %58 = math.exp %57 : vector<8x8xf32>
    %59 = arith.subf %52, %55 : vector<8x1xf32>
    %60 = math.exp %59 : vector<8x1xf32>
    %cst_26 = arith.constant dense<0.000000e+00> : vector<8xf32>
    %61 = vector.multi_reduction <add>, %58, %cst_26 [1] : vector<8x8xf32> to vector<8xf32>
    %62 = vector.shape_cast %61 : vector<8xf32> to vector<8x1xf32>
    %63 = arith.addf %62, %60 : vector<8x1xf32>
    %cst_27 = arith.constant 1.000000e+00 : f32
    %64 = vector.broadcast %cst_27 : f32 to vector<8x1xf32>
    %65 = arith.divf %64, %63 : vector<8x1xf32>
    %66 = vector.broadcast %65 : vector<8x1xf32> to vector<8x8xf32>
    %67 = arith.mulf %58, %66 : vector<8x8xf32>
    %68 = arith.mulf %60, %65 : vector<8x1xf32>
    %69 = arith.truncf %67 : vector<8x8xf32> to vector<8x8xbf16>
    %70 = vector.extract_strided_slice %39 {offsets = [0, 0], sizes = [8, 8], strides = [1, 1]} : vector<8x32xbf16> to vector<8x8xbf16>
    %cst_28 = arith.constant dense<0.000000e+00> : vector<8x8xf32>
    %71 = tpu.matmul %69, %70, %cst_28 {dimension_numbers = #tpu.dot_dimension_numbers<[1], [0], [0], [1], [0, 0, 1, 1], [], []>} : vector<8x8xbf16>, vector<8x8xbf16>, vector<8x8xf32> -> vector<8x8xf32>
    %72 = vector.extract_strided_slice %41 {offsets = [0, 0], sizes = [1, 8], strides = [1, 1]} : vector<1x32xf32> to vector<1x8xf32>
    %73 = vector.broadcast %68 : vector<8x1xf32> to vector<8x8xf32>
    %74 = vector.broadcast %72 : vector<1x8xf32> to vector<8x8xf32>
    %75 = arith.mulf %73, %74 : vector<8x8xf32>
    %76 = arith.addf %71, %75 : vector<8x8xf32>
    %77 = arith.truncf %76 : vector<8x8xf32> to vector<8x8xbf16>
    %c0_29 = arith.constant 0 : index
    %c0_30 = arith.constant 0 : index
    %78 = vector.load %arg23[%c0_29, %c0_30] : memref<8x32xbf16, #tpu.memory_space<vmem>>, vector<8x8xbf16>
    tpu.vector_store %arg23[%c0_29, %c0_30], %77 {strides = array<i32>} : memref<8x32xbf16, #tpu.memory_space<vmem>>, vector<8x8xbf16>,
    %79 = arith.addf %42, %67 : vector<8x8xf32>
    %80 = arith.addf %43, %68 : vector<8x1xf32>
    %81 = vector.extract_strided_slice %37 {offsets = [0, 8], sizes = [8, 8], strides = [1, 1]} : vector<8x32xbf16> to vector<8x8xbf16>
    %82 = vector.extract_strided_slice %38 {offsets = [0, 8], sizes = [8, 8], strides = [1, 1]} : vector<8x32xbf16> to vector<8x8xbf16>
    %cst_31 = arith.constant dense<0.000000e+00> : vector<8x8xf32>
    %83 = tpu.matmul %81, %82, %cst_31 {dimension_numbers = #tpu.dot_dimension_numbers<[1], [1], [0], [0], [0, 0, 1, 0], [], []>} : vector<8x8xbf16>, vector<8x8xbf16>, vector<8x8xf32> -> vector<8x8xf32>
    %84 = vector.extract_strided_slice %34 {offsets = [0, 8], sizes = [8, 8], strides = [1, 1]} : vector<8x32xf32> to vector<8x8xf32>
    %85 = vector.extract_strided_slice %40 {offsets = [0, 8], sizes = [1, 8], strides = [1, 1]} : vector<1x32xf32> to vector<1x8xf32>
    %86 = vector.broadcast %85 : vector<1x8xf32> to vector<8x8xf32>
    %87 = arith.mulf %84, %86 : vector<8x8xf32>
    %cst_32 = arith.constant dense<0.000000e+00> : vector<8xf32>
    %88 = vector.multi_reduction <add>, %87, %cst_32 [1] : vector<8x8xf32> to vector<8xf32>
    %89 = vector.shape_cast %88 : vector<8xf32> to vector<8x1xf32>
    %cst_33 = arith.constant dense<0xFF800000> : vector<8xf32>
    %90 = vector.multi_reduction <maximumf>, %83, %cst_33 [1] : vector<8x8xf32> to vector<8xf32>
    %91 = vector.shape_cast %90 : vector<8xf32> to vector<8x1xf32>
    %92 = arith.maximumf %91, %89 : vector<8x1xf32>
    %93 = vector.broadcast %92 : vector<8x1xf32> to vector<8x8xf32>
    %94 = arith.subf %83, %93 : vector<8x8xf32>
    %95 = math.exp %94 : vector<8x8xf32>
    %96 = arith.subf %89, %92 : vector<8x1xf32>
    %97 = math.exp %96 : vector<8x1xf32>
    %cst_34 = arith.constant dense<0.000000e+00> : vector<8xf32>
    %98 = vector.multi_reduction <add>, %95, %cst_34 [1] : vector<8x8xf32> to vector<8xf32>
    %99 = vector.shape_cast %98 : vector<8xf32> to vector<8x1xf32>
    %100 = arith.addf %99, %97 : vector<8x1xf32>
    %cst_35 = arith.constant 1.000000e+00 : f32
    %101 = vector.broadcast %cst_35 : f32 to vector<8x1xf32>
    %102 = arith.divf %101, %100 : vector<8x1xf32>
    %103 = vector.broadcast %102 : vector<8x1xf32> to vector<8x8xf32>
    %104 = arith.mulf %95, %103 : vector<8x8xf32>
    %105 = arith.mulf %97, %102 : vector<8x1xf32>
    %106 = arith.truncf %104 : vector<8x8xf32> to vector<8x8xbf16>
    %107 = vector.extract_strided_slice %39 {offsets = [0, 8], sizes = [8, 8], strides = [1, 1]} : vector<8x32xbf16> to vector<8x8xbf16>
    %cst_36 = arith.constant dense<0.000000e+00> : vector<8x8xf32>
    %108 = tpu.matmul %106, %107, %cst_36 {dimension_numbers = #tpu.dot_dimension_numbers<[1], [0], [0], [1], [0, 0, 1, 1], [], []>} : vector<8x8xbf16>, vector<8x8xbf16>, vector<8x8xf32> -> vector<8x8xf32>
    %109 = vector.extract_strided_slice %41 {offsets = [0, 8], sizes = [1, 8], strides = [1, 1]} : vector<1x32xf32> to vector<1x8xf32>
    %110 = vector.broadcast %105 : vector<8x1xf32> to vector<8x8xf32>
    %111 = vector.broadcast %109 : vector<1x8xf32> to vector<8x8xf32>
    %112 = arith.mulf %110, %111 : vector<8x8xf32>
    %113 = arith.addf %108, %112 : vector<8x8xf32>
    %114 = arith.truncf %113 : vector<8x8xf32> to vector<8x8xbf16>
    %c0_37 = arith.constant 0 : index
    %c8 = arith.constant 8 : index
    %115 = vector.load %arg23[%c0_37, %c8] : memref<8x32xbf16, #tpu.memory_space<vmem>>, vector<8x8xbf16>
    tpu.vector_store %arg23[%c0_37, %c8], %114 {strides = array<i32>} : memref<8x32xbf16, #tpu.memory_space<vmem>>, vector<8x8xbf16>,
    %116 = arith.addf %79, %104 : vector<8x8xf32>
    %117 = arith.addf %80, %105 : vector<8x1xf32>
    %118 = vector.extract_strided_slice %37 {offsets = [0, 16], sizes = [8, 8], strides = [1, 1]} : vector<8x32xbf16> to vector<8x8xbf16>
    %119 = vector.extract_strided_slice %38 {offsets = [0, 16], sizes = [8, 8], strides = [1, 1]} : vector<8x32xbf16> to vector<8x8xbf16>
    %cst_38 = arith.constant dense<0.000000e+00> : vector<8x8xf32>
    %120 = tpu.matmul %118, %119, %cst_38 {dimension_numbers = #tpu.dot_dimension_numbers<[1], [1], [0], [0], [0, 0, 1, 0], [], []>} : vector<8x8xbf16>, vector<8x8xbf16>, vector<8x8xf32> -> vector<8x8xf32>
    %121 = vector.extract_strided_slice %34 {offsets = [0, 16], sizes = [8, 8], strides = [1, 1]} : vector<8x32xf32> to vector<8x8xf32>
    %122 = vector.extract_strided_slice %40 {offsets = [0, 16], sizes = [1, 8], strides = [1, 1]} : vector<1x32xf32> to vector<1x8xf32>
    %123 = vector.broadcast %122 : vector<1x8xf32> to vector<8x8xf32>
    %124 = arith.mulf %121, %123 : vector<8x8xf32>
    %cst_39 = arith.constant dense<0.000000e+00> : vector<8xf32>
    %125 = vector.multi_reduction <add>, %124, %cst_39 [1] : vector<8x8xf32> to vector<8xf32>
    %126 = vector.shape_cast %125 : vector<8xf32> to vector<8x1xf32>
    %cst_40 = arith.constant dense<0xFF800000> : vector<8xf32>
    %127 = vector.multi_reduction <maximumf>, %120, %cst_40 [1] : vector<8x8xf32> to vector<8xf32>
    %128 = vector.shape_cast %127 : vector<8xf32> to vector<8x1xf32>
    %129 = arith.maximumf %128, %126 : vector<8x1xf32>
    %130 = vector.broadcast %129 : vector<8x1xf32> to vector<8x8xf32>
    %131 = arith.subf %120, %130 : vector<8x8xf32>
    %132 = math.exp %131 : vector<8x8xf32>
    %133 = arith.subf %126, %129 : vector<8x1xf32>
    %134 = math.exp %133 : vector<8x1xf32>
    %cst_41 = arith.constant dense<0.000000e+00> : vector<8xf32>
    %135 = vector.multi_reduction <add>, %132, %cst_41 [1] : vector<8x8xf32> to vector<8xf32>
    %136 = vector.shape_cast %135 : vector<8xf32> to vector<8x1xf32>
    %137 = arith.addf %136, %134 : vector<8x1xf32>
    %cst_42 = arith.constant 1.000000e+00 : f32
    %138 = vector.broadcast %cst_42 : f32 to vector<8x1xf32>
    %139 = arith.divf %138, %137 : vector<8x1xf32>
    %140 = vector.broadcast %139 : vector<8x1xf32> to vector<8x8xf32>
    %141 = arith.mulf %132, %140 : vector<8x8xf32>
    %142 = arith.mulf %134, %139 : vector<8x1xf32>
    %143 = arith.truncf %141 : vector<8x8xf32> to vector<8x8xbf16>
    %144 = vector.extract_strided_slice %39 {offsets = [0, 16], sizes = [8, 8], strides = [1, 1]} : vector<8x32xbf16> to vector<8x8xbf16>
    %cst_43 = arith.constant dense<0.000000e+00> : vector<8x8xf32>
    %145 = tpu.matmul %143, %144, %cst_43 {dimension_numbers = #tpu.dot_dimension_numbers<[1], [0], [0], [1], [0, 0, 1, 1], [], []>} : vector<8x8xbf16>, vector<8x8xbf16>, vector<8x8xf32> -> vector<8x8xf32>
    %146 = vector.extract_strided_slice %41 {offsets = [0, 16], sizes = [1, 8], strides = [1, 1]} : vector<1x32xf32> to vector<1x8xf32>
    %147 = vector.broadcast %142 : vector<8x1xf32> to vector<8x8xf32>
    %148 = vector.broadcast %146 : vector<1x8xf32> to vector<8x8xf32>
    %149 = arith.mulf %147, %148 : vector<8x8xf32>
    %150 = arith.addf %145, %149 : vector<8x8xf32>
    %151 = arith.truncf %150 : vector<8x8xf32> to vector<8x8xbf16>
    %c0_44 = arith.constant 0 : index
    %c16 = arith.constant 16 : index
    %152 = vector.load %arg23[%c0_44, %c16] : memref<8x32xbf16, #tpu.memory_space<vmem>>, vector<8x8xbf16>
    tpu.vector_store %arg23[%c0_44, %c16], %151 {strides = array<i32>} : memref<8x32xbf16, #tpu.memory_space<vmem>>, vector<8x8xbf16>,
    %153 = arith.addf %116, %141 : vector<8x8xf32>
    %154 = arith.addf %117, %142 : vector<8x1xf32>
    %155 = vector.extract_strided_slice %37 {offsets = [0, 24], sizes = [8, 8], strides = [1, 1]} : vector<8x32xbf16> to vector<8x8xbf16>
    %156 = vector.extract_strided_slice %38 {offsets = [0, 24], sizes = [8, 8], strides = [1, 1]} : vector<8x32xbf16> to vector<8x8xbf16>
    %cst_45 = arith.constant dense<0.000000e+00> : vector<8x8xf32>
    %157 = tpu.matmul %155, %156, %cst_45 {dimension_numbers = #tpu.dot_dimension_numbers<[1], [1], [0], [0], [0, 0, 1, 0], [], []>} : vector<8x8xbf16>, vector<8x8xbf16>, vector<8x8xf32> -> vector<8x8xf32>
    %158 = vector.extract_strided_slice %34 {offsets = [0, 24], sizes = [8, 8], strides = [1, 1]} : vector<8x32xf32> to vector<8x8xf32>
    %159 = vector.extract_strided_slice %40 {offsets = [0, 24], sizes = [1, 8], strides = [1, 1]} : vector<1x32xf32> to vector<1x8xf32>
    %160 = vector.broadcast %159 : vector<1x8xf32> to vector<8x8xf32>
    %161 = arith.mulf %158, %160 : vector<8x8xf32>
    %cst_46 = arith.constant dense<0.000000e+00> : vector<8xf32>
    %162 = vector.multi_reduction <add>, %161, %cst_46 [1] : vector<8x8xf32> to vector<8xf32>
    %163 = vector.shape_cast %162 : vector<8xf32> to vector<8x1xf32>
    %cst_47 = arith.constant dense<0xFF800000> : vector<8xf32>
    %164 = vector.multi_reduction <maximumf>, %157, %cst_47 [1] : vector<8x8xf32> to vector<8xf32>
    %165 = vector.shape_cast %164 : vector<8xf32> to vector<8x1xf32>
    %166 = arith.maximumf %165, %163 : vector<8x1xf32>
    %167 = vector.broadcast %166 : vector<8x1xf32> to vector<8x8xf32>
    %168 = arith.subf %157, %167 : vector<8x8xf32>
    %169 = math.exp %168 : vector<8x8xf32>
    %170 = arith.subf %163, %166 : vector<8x1xf32>
    %171 = math.exp %170 : vector<8x1xf32>
    %cst_48 = arith.constant dense<0.000000e+00> : vector<8xf32>
    %172 = vector.multi_reduction <add>, %169, %cst_48 [1] : vector<8x8xf32> to vector<8xf32>
    %173 = vector.shape_cast %172 : vector<8xf32> to vector<8x1xf32>
    %174 = arith.addf %173, %171 : vector<8x1xf32>
    %cst_49 = arith.constant 1.000000e+00 : f32
    %175 = vector.broadcast %cst_49 : f32 to vector<8x1xf32>
    %176 = arith.divf %175, %174 : vector<8x1xf32>
    %177 = vector.broadcast %176 : vector<8x1xf32> to vector<8x8xf32>
    %178 = arith.mulf %169, %177 : vector<8x8xf32>
    %179 = arith.mulf %171, %176 : vector<8x1xf32>
    %180 = arith.truncf %178 : vector<8x8xf32> to vector<8x8xbf16>
    %181 = vector.extract_strided_slice %39 {offsets = [0, 24], sizes = [8, 8], strides = [1, 1]} : vector<8x32xbf16> to vector<8x8xbf16>
    %cst_50 = arith.constant dense<0.000000e+00> : vector<8x8xf32>
    %182 = tpu.matmul %180, %181, %cst_50 {dimension_numbers = #tpu.dot_dimension_numbers<[1], [0], [0], [1], [0, 0, 1, 1], [], []>} : vector<8x8xbf16>, vector<8x8xbf16>, vector<8x8xf32> -> vector<8x8xf32>
    %183 = vector.extract_strided_slice %41 {offsets = [0, 24], sizes = [1, 8], strides = [1, 1]} : vector<1x32xf32> to vector<1x8xf32>
    %184 = vector.broadcast %179 : vector<8x1xf32> to vector<8x8xf32>
    %185 = vector.broadcast %183 : vector<1x8xf32> to vector<8x8xf32>
    %186 = arith.mulf %184, %185 : vector<8x8xf32>
    %187 = arith.addf %182, %186 : vector<8x8xf32>
    %188 = arith.truncf %187 : vector<8x8xf32> to vector<8x8xbf16>
    %c0_51 = arith.constant 0 : index
    %c24 = arith.constant 24 : index
    %189 = vector.load %arg23[%c0_51, %c24] : memref<8x32xbf16, #tpu.memory_space<vmem>>, vector<8x8xbf16>
    tpu.vector_store %arg23[%c0_51, %c24], %188 {strides = array<i32>} : memref<8x32xbf16, #tpu.memory_space<vmem>>, vector<8x8xbf16>,
    %190 = arith.addf %153, %178 : vector<8x8xf32>
    %191 = arith.addf %154, %179 : vector<8x1xf32>
    %c0_52 = arith.constant 0 : index
    %c0_53 = arith.constant 0 : index
    %192 = vector.load %arg23[%c0_52, %c0_53] : memref<8x32xbf16, #tpu.memory_space<vmem>>, vector<8x32xbf16>
    %c0_54 = arith.constant 0 : index
    %c0_55 = arith.constant 0 : index
    %193 = vector.load %arg7[%c0_54, %c0_55] : memref<32x32xbf16, #tpu.memory_space<vmem>>, vector<32x32xbf16>
    %cst_56 = arith.constant dense<0.000000e+00> : vector<8x32xf32>
    %194 = tpu.matmul %192, %193, %cst_56 {dimension_numbers = #tpu.dot_dimension_numbers<[1], [0], [0], [1], [0, 0, 1, 1], [], []>} : vector<8x32xbf16>, vector<32x32xbf16>, vector<8x32xf32> -> vector<8x32xf32>
    %c0_57 = arith.constant 0 : index
    %c0_58 = arith.constant 0 : index
    %195 = vector.load %arg8[%c0_57, %c0_58] : memref<1x32xf32, #tpu.memory_space<vmem>>, vector<1x32xf32>
    %196 = vector.broadcast %195 : vector<1x32xf32> to vector<8x32xf32>
    %197 = arith.addf %194, %196 : vector<8x32xf32>
    %cst_59 = arith.constant 2.500000e-01 : f32
    %198 = vector.broadcast %cst_59 : f32 to vector<8x8xf32>
    %199 = arith.mulf %190, %198 : vector<8x8xf32>
    %c0_60 = arith.constant 0 : index
    %c0_61 = arith.constant 0 : index
    %c0_62 = arith.constant 0 : index
    %200 = vector.load %arg21[%c0_60, %c0_61, %c0_62] : memref<1x8x9xf32, #tpu.memory_space<vmem>>, vector<1x8x8xf32>
    %201 = vector.shape_cast %200 : vector<1x8x8xf32> to vector<8x8xf32>
    %202 = vector.shape_cast %199 : vector<8x8xf32> to vector<1x8x8xf32>
    tpu.vector_store %arg21[%c0_60, %c0_61, %c0_62], %202 {strides = array<i32>} : memref<1x8x9xf32, #tpu.memory_space<vmem>>, vector<1x8x8xf32>,
    %cst_63 = arith.constant 2.500000e-01 : f32
    %203 = vector.broadcast %cst_63 : f32 to vector<8x1xf32>
    %204 = arith.mulf %191, %203 : vector<8x1xf32>
    %c0_64 = arith.constant 0 : index
    %c0_65 = arith.constant 0 : index
    %c8_66 = arith.constant 8 : index
    %205 = vector.load %arg21[%c0_64, %c0_65, %c8_66] : memref<1x8x9xf32, #tpu.memory_space<vmem>>, vector<1x8x1xf32>
    %206 = vector.shape_cast %205 : vector<1x8x1xf32> to vector<8x1xf32>
    %207 = vector.shape_cast %204 : vector<8x1xf32> to vector<1x8x1xf32>
    tpu.vector_store %arg21[%c0_64, %c0_65, %c8_66], %207 {strides = array<i32>} : memref<1x8x9xf32, #tpu.memory_space<vmem>>, vector<1x8x1xf32>,
    %208 = arith.addf %1, %197 : vector<8x32xf32>
    %c2 = arith.constant 2 : index
    %c0_67 = arith.constant 0 : index
    %209 = vector.load %arg3[%c2, %c0_67] : memref<8x32xf32, #tpu.memory_space<vmem>>, vector<1x32xf32>
    %c3 = arith.constant 3 : index
    %c0_68 = arith.constant 0 : index
    %210 = vector.load %arg3[%c3, %c0_68] : memref<8x32xf32, #tpu.memory_space<vmem>>, vector<1x32xf32>
    %cst_69 = arith.constant dense<0.000000e+00> : vector<8xf32>
    %211 = vector.multi_reduction <add>, %208, %cst_69 [1] : vector<8x32xf32> to vector<8xf32>
    %212 = vector.shape_cast %211 : vector<8xf32> to vector<8x1xf32>
    %cst_70 = arith.constant 3.200000e+01 : f32
    %213 = vector.broadcast %cst_70 : f32 to vector<8x1xf32>
    %214 = arith.divf %212, %213 : vector<8x1xf32>
    %215 = vector.broadcast %214 : vector<8x1xf32> to vector<8x32xf32>
    %216 = arith.subf %208, %215 : vector<8x32xf32>
    %217 = arith.mulf %216, %216 : vector<8x32xf32>
    %cst_71 = arith.constant dense<0.000000e+00> : vector<8xf32>
    %218 = vector.multi_reduction <add>, %217, %cst_71 [1] : vector<8x32xf32> to vector<8xf32>
    %219 = vector.shape_cast %218 : vector<8xf32> to vector<8x1xf32>
    %cst_72 = arith.constant 3.200000e+01 : f32
    %220 = vector.broadcast %cst_72 : f32 to vector<8x1xf32>
    %221 = arith.divf %219, %220 : vector<8x1xf32>
    %222 = vector.broadcast %214 : vector<8x1xf32> to vector<8x32xf32>
    %223 = arith.subf %208, %222 : vector<8x32xf32>
    %cst_73 = arith.constant 9.99999974E-6 : f32
    %224 = vector.broadcast %cst_73 : f32 to vector<8x1xf32>
    %225 = arith.addf %221, %224 : vector<8x1xf32>
    %226 = math.rsqrt %225 : vector<8x1xf32>
    %227 = vector.broadcast %226 : vector<8x1xf32> to vector<8x32xf32>
    %228 = arith.mulf %223, %227 : vector<8x32xf32>
    %229 = vector.broadcast %209 : vector<1x32xf32> to vector<8x32xf32>
    %230 = arith.mulf %228, %229 : vector<8x32xf32>
    %231 = vector.broadcast %210 : vector<1x32xf32> to vector<8x32xf32>
    %232 = arith.addf %230, %231 : vector<8x32xf32>
    %233 = arith.truncf %232 : vector<8x32xf32> to vector<8x32xbf16>
    %c0_74 = arith.constant 0 : index
    %c0_75 = arith.constant 0 : index
    %234 = vector.load %arg9[%c0_74, %c0_75] : memref<32x32xbf16, #tpu.memory_space<vmem>>, vector<32x32xbf16>
    %cst_76 = arith.constant dense<0.000000e+00> : vector<8x32xf32>
    %235 = tpu.matmul %233, %234, %cst_76 {dimension_numbers = #tpu.dot_dimension_numbers<[1], [0], [0], [1], [0, 0, 1, 1], [], []>} : vector<8x32xbf16>, vector<32x32xbf16>, vector<8x32xf32> -> vector<8x32xf32>
    %c0_77 = arith.constant 0 : index
    %c0_78 = arith.constant 0 : index
    %236 = vector.load %arg10[%c0_77, %c0_78] : memref<1x32xf32, #tpu.memory_space<vmem>>, vector<1x32xf32>
    %237 = vector.broadcast %236 : vector<1x32xf32> to vector<8x32xf32>
    %238 = arith.addf %235, %237 : vector<8x32xf32>
    %239 = arith.truncf %3 : vector<8x32xf32> to vector<8x32xbf16>
    %c0_79 = arith.constant 0 : index
    %c0_80 = arith.constant 0 : index
    %240 = vector.load %arg11[%c0_79, %c0_80] : memref<32x64xbf16, #tpu.memory_space<vmem>>, vector<32x64xbf16>
    %cst_81 = arith.constant dense<0.000000e+00> : vector<8x64xf32>
    %241 = tpu.matmul %239, %240, %cst_81 {dimension_numbers = #tpu.dot_dimension_numbers<[1], [0], [0], [1], [0, 0, 1, 1], [], []>} : vector<8x32xbf16>, vector<32x64xbf16>, vector<8x64xf32> -> vector<8x64xf32>
    %c0_82 = arith.constant 0 : index
    %c0_83 = arith.constant 0 : index
    %242 = vector.load %arg12[%c0_82, %c0_83] : memref<1x64xf32, #tpu.memory_space<vmem>>, vector<1x64xf32>
    %243 = vector.broadcast %242 : vector<1x64xf32> to vector<8x64xf32>
    %244 = arith.addf %241, %243 : vector<8x64xf32>
    %245 = vector.extract_strided_slice %244 {offsets = [0, 0], sizes = [8, 32], strides = [1, 1]} : vector<8x64xf32> to vector<8x32xf32>
    %246 = vector.extract_strided_slice %244 {offsets = [0, 32], sizes = [8, 32], strides = [1, 1]} : vector<8x64xf32> to vector<8x32xf32>
    %247 = arith.truncf %238 : vector<8x32xf32> to vector<8x32xbf16>
    %248 = arith.truncf %245 : vector<8x32xf32> to vector<8x32xbf16>
    %249 = arith.truncf %246 : vector<8x32xf32> to vector<8x32xbf16>
    %c0_84 = arith.constant 0 : index
    %c0_85 = arith.constant 0 : index
    %250 = vector.load %arg13[%c0_84, %c0_85] : memref<2x32xf32, #tpu.memory_space<vmem>>, vector<1x32xf32>
    %c1_86 = arith.constant 1 : index
    %c0_87 = arith.constant 0 : index
    %251 = vector.load %arg13[%c1_86, %c0_87] : memref<2x32xf32, #tpu.memory_space<vmem>>, vector<1x32xf32>
    %cst_88 = arith.constant 0.000000e+00 : f32
    %252 = vector.broadcast %cst_88 : f32 to vector<8x8xf32>
    %cst_89 = arith.constant 0.000000e+00 : f32
    %253 = vector.broadcast %cst_89 : f32 to vector<8x1xf32>
    %254 = vector.extract_strided_slice %247 {offsets = [0, 0], sizes = [8, 8], strides = [1, 1]} : vector<8x32xbf16> to vector<8x8xbf16>
    %255 = vector.extract_strided_slice %248 {offsets = [0, 0], sizes = [8, 8], strides = [1, 1]} : vector<8x32xbf16> to vector<8x8xbf16>
    %cst_90 = arith.constant dense<0.000000e+00> : vector<8x8xf32>
    %256 = tpu.matmul %254, %255, %cst_90 {dimension_numbers = #tpu.dot_dimension_numbers<[1], [1], [0], [0], [0, 0, 1, 0], [], []>} : vector<8x8xbf16>, vector<8x8xbf16>, vector<8x8xf32> -> vector<8x8xf32>
    %257 = vector.extract_strided_slice %238 {offsets = [0, 0], sizes = [8, 8], strides = [1, 1]} : vector<8x32xf32> to vector<8x8xf32>
    %258 = vector.extract_strided_slice %250 {offsets = [0, 0], sizes = [1, 8], strides = [1, 1]} : vector<1x32xf32> to vector<1x8xf32>
    %259 = vector.broadcast %258 : vector<1x8xf32> to vector<8x8xf32>
    %260 = arith.mulf %257, %259 : vector<8x8xf32>
    %cst_91 = arith.constant dense<0.000000e+00> : vector<8xf32>
    %261 = vector.multi_reduction <add>, %260, %cst_91 [1] : vector<8x8xf32> to vector<8xf32>
    %262 = vector.shape_cast %261 : vector<8xf32> to vector<8x1xf32>
    %cst_92 = arith.constant dense<0xFF800000> : vector<8xf32>
    %263 = vector.multi_reduction <maximumf>, %256, %cst_92 [1] : vector<8x8xf32> to vector<8xf32>
    %264 = vector.shape_cast %263 : vector<8xf32> to vector<8x1xf32>
    %265 = arith.maximumf %264, %262 : vector<8x1xf32>
    %266 = vector.broadcast %265 : vector<8x1xf32> to vector<8x8xf32>
    %267 = arith.subf %256, %266 : vector<8x8xf32>
    %268 = math.exp %267 : vector<8x8xf32>
    %269 = arith.subf %262, %265 : vector<8x1xf32>
    %270 = math.exp %269 : vector<8x1xf32>
    %cst_93 = arith.constant dense<0.000000e+00> : vector<8xf32>
    %271 = vector.multi_reduction <add>, %268, %cst_93 [1] : vector<8x8xf32> to vector<8xf32>
    %272 = vector.shape_cast %271 : vector<8xf32> to vector<8x1xf32>
    %273 = arith.addf %272, %270 : vector<8x1xf32>
    %cst_94 = arith.constant 1.000000e+00 : f32
    %274 = vector.broadcast %cst_94 : f32 to vector<8x1xf32>
    %275 = arith.divf %274, %273 : vector<8x1xf32>
    %276 = vector.broadcast %275 : vector<8x1xf32> to vector<8x8xf32>
    %277 = arith.mulf %268, %276 : vector<8x8xf32>
    %278 = arith.mulf %270, %275 : vector<8x1xf32>
    %279 = arith.truncf %277 : vector<8x8xf32> to vector<8x8xbf16>
    %280 = vector.extract_strided_slice %249 {offsets = [0, 0], sizes = [8, 8], strides = [1, 1]} : vector<8x32xbf16> to vector<8x8xbf16>
    %cst_95 = arith.constant dense<0.000000e+00> : vector<8x8xf32>
    %281 = tpu.matmul %279, %280, %cst_95 {dimension_numbers = #tpu.dot_dimension_numbers<[1], [0], [0], [1], [0, 0, 1, 1], [], []>} : vector<8x8xbf16>, vector<8x8xbf16>, vector<8x8xf32> -> vector<8x8xf32>
    %282 = vector.extract_strided_slice %251 {offsets = [0, 0], sizes = [1, 8], strides = [1, 1]} : vector<1x32xf32> to vector<1x8xf32>
    %283 = vector.broadcast %278 : vector<8x1xf32> to vector<8x8xf32>
    %284 = vector.broadcast %282 : vector<1x8xf32> to vector<8x8xf32>
    %285 = arith.mulf %283, %284 : vector<8x8xf32>
    %286 = arith.addf %281, %285 : vector<8x8xf32>
    %287 = arith.truncf %286 : vector<8x8xf32> to vector<8x8xbf16>
    %c0_96 = arith.constant 0 : index
    %c0_97 = arith.constant 0 : index
    %288 = vector.load %arg23[%c0_96, %c0_97] : memref<8x32xbf16, #tpu.memory_space<vmem>>, vector<8x8xbf16>
    tpu.vector_store %arg23[%c0_96, %c0_97], %287 {strides = array<i32>} : memref<8x32xbf16, #tpu.memory_space<vmem>>, vector<8x8xbf16>,
    %289 = arith.addf %252, %277 : vector<8x8xf32>
    %290 = arith.addf %253, %278 : vector<8x1xf32>
    %291 = vector.extract_strided_slice %247 {offsets = [0, 8], sizes = [8, 8], strides = [1, 1]} : vector<8x32xbf16> to vector<8x8xbf16>
    %292 = vector.extract_strided_slice %248 {offsets = [0, 8], sizes = [8, 8], strides = [1, 1]} : vector<8x32xbf16> to vector<8x8xbf16>
    %cst_98 = arith.constant dense<0.000000e+00> : vector<8x8xf32>
    %293 = tpu.matmul %291, %292, %cst_98 {dimension_numbers = #tpu.dot_dimension_numbers<[1], [1], [0], [0], [0, 0, 1, 0], [], []>} : vector<8x8xbf16>, vector<8x8xbf16>, vector<8x8xf32> -> vector<8x8xf32>
    %294 = vector.extract_strided_slice %238 {offsets = [0, 8], sizes = [8, 8], strides = [1, 1]} : vector<8x32xf32> to vector<8x8xf32>
    %295 = vector.extract_strided_slice %250 {offsets = [0, 8], sizes = [1, 8], strides = [1, 1]} : vector<1x32xf32> to vector<1x8xf32>
    %296 = vector.broadcast %295 : vector<1x8xf32> to vector<8x8xf32>
    %297 = arith.mulf %294, %296 : vector<8x8xf32>
    %cst_99 = arith.constant dense<0.000000e+00> : vector<8xf32>
    %298 = vector.multi_reduction <add>, %297, %cst_99 [1] : vector<8x8xf32> to vector<8xf32>
    %299 = vector.shape_cast %298 : vector<8xf32> to vector<8x1xf32>
    %cst_100 = arith.constant dense<0xFF800000> : vector<8xf32>
    %300 = vector.multi_reduction <maximumf>, %293, %cst_100 [1] : vector<8x8xf32> to vector<8xf32>
    %301 = vector.shape_cast %300 : vector<8xf32> to vector<8x1xf32>
    %302 = arith.maximumf %301, %299 : vector<8x1xf32>
    %303 = vector.broadcast %302 : vector<8x1xf32> to vector<8x8xf32>
    %304 = arith.subf %293, %303 : vector<8x8xf32>
    %305 = math.exp %304 : vector<8x8xf32>
    %306 = arith.subf %299, %302 : vector<8x1xf32>
    %307 = math.exp %306 : vector<8x1xf32>
    %cst_101 = arith.constant dense<0.000000e+00> : vector<8xf32>
    %308 = vector.multi_reduction <add>, %305, %cst_101 [1] : vector<8x8xf32> to vector<8xf32>
    %309 = vector.shape_cast %308 : vector<8xf32> to vector<8x1xf32>
    %310 = arith.addf %309, %307 : vector<8x1xf32>
    %cst_102 = arith.constant 1.000000e+00 : f32
    %311 = vector.broadcast %cst_102 : f32 to vector<8x1xf32>
    %312 = arith.divf %311, %310 : vector<8x1xf32>
    %313 = vector.broadcast %312 : vector<8x1xf32> to vector<8x8xf32>
    %314 = arith.mulf %305, %313 : vector<8x8xf32>
    %315 = arith.mulf %307, %312 : vector<8x1xf32>
    %316 = arith.truncf %314 : vector<8x8xf32> to vector<8x8xbf16>
    %317 = vector.extract_strided_slice %249 {offsets = [0, 8], sizes = [8, 8], strides = [1, 1]} : vector<8x32xbf16> to vector<8x8xbf16>
    %cst_103 = arith.constant dense<0.000000e+00> : vector<8x8xf32>
    %318 = tpu.matmul %316, %317, %cst_103 {dimension_numbers = #tpu.dot_dimension_numbers<[1], [0], [0], [1], [0, 0, 1, 1], [], []>} : vector<8x8xbf16>, vector<8x8xbf16>, vector<8x8xf32> -> vector<8x8xf32>
    %319 = vector.extract_strided_slice %251 {offsets = [0, 8], sizes = [1, 8], strides = [1, 1]} : vector<1x32xf32> to vector<1x8xf32>
    %320 = vector.broadcast %315 : vector<8x1xf32> to vector<8x8xf32>
    %321 = vector.broadcast %319 : vector<1x8xf32> to vector<8x8xf32>
    %322 = arith.mulf %320, %321 : vector<8x8xf32>
    %323 = arith.addf %318, %322 : vector<8x8xf32>
    %324 = arith.truncf %323 : vector<8x8xf32> to vector<8x8xbf16>
    %c0_104 = arith.constant 0 : index
    %c8_105 = arith.constant 8 : index
    %325 = vector.load %arg23[%c0_104, %c8_105] : memref<8x32xbf16, #tpu.memory_space<vmem>>, vector<8x8xbf16>
    tpu.vector_store %arg23[%c0_104, %c8_105], %324 {strides = array<i32>} : memref<8x32xbf16, #tpu.memory_space<vmem>>, vector<8x8xbf16>,
    %326 = arith.addf %289, %314 : vector<8x8xf32>
    %327 = arith.addf %290, %315 : vector<8x1xf32>
    %328 = vector.extract_strided_slice %247 {offsets = [0, 16], sizes = [8, 8], strides = [1, 1]} : vector<8x32xbf16> to vector<8x8xbf16>
    %329 = vector.extract_strided_slice %248 {offsets = [0, 16], sizes = [8, 8], strides = [1, 1]} : vector<8x32xbf16> to vector<8x8xbf16>
    %cst_106 = arith.constant dense<0.000000e+00> : vector<8x8xf32>
    %330 = tpu.matmul %328, %329, %cst_106 {dimension_numbers = #tpu.dot_dimension_numbers<[1], [1], [0], [0], [0, 0, 1, 0], [], []>} : vector<8x8xbf16>, vector<8x8xbf16>, vector<8x8xf32> -> vector<8x8xf32>
    %331 = vector.extract_strided_slice %238 {offsets = [0, 16], sizes = [8, 8], strides = [1, 1]} : vector<8x32xf32> to vector<8x8xf32>
    %332 = vector.extract_strided_slice %250 {offsets = [0, 16], sizes = [1, 8], strides = [1, 1]} : vector<1x32xf32> to vector<1x8xf32>
    %333 = vector.broadcast %332 : vector<1x8xf32> to vector<8x8xf32>
    %334 = arith.mulf %331, %333 : vector<8x8xf32>
    %cst_107 = arith.constant dense<0.000000e+00> : vector<8xf32>
    %335 = vector.multi_reduction <add>, %334, %cst_107 [1] : vector<8x8xf32> to vector<8xf32>
    %336 = vector.shape_cast %335 : vector<8xf32> to vector<8x1xf32>
    %cst_108 = arith.constant dense<0xFF800000> : vector<8xf32>
    %337 = vector.multi_reduction <maximumf>, %330, %cst_108 [1] : vector<8x8xf32> to vector<8xf32>
    %338 = vector.shape_cast %337 : vector<8xf32> to vector<8x1xf32>
    %339 = arith.maximumf %338, %336 : vector<8x1xf32>
    %340 = vector.broadcast %339 : vector<8x1xf32> to vector<8x8xf32>
    %341 = arith.subf %330, %340 : vector<8x8xf32>
    %342 = math.exp %341 : vector<8x8xf32>
    %343 = arith.subf %336, %339 : vector<8x1xf32>
    %344 = math.exp %343 : vector<8x1xf32>
    %cst_109 = arith.constant dense<0.000000e+00> : vector<8xf32>
    %345 = vector.multi_reduction <add>, %342, %cst_109 [1] : vector<8x8xf32> to vector<8xf32>
    %346 = vector.shape_cast %345 : vector<8xf32> to vector<8x1xf32>
    %347 = arith.addf %346, %344 : vector<8x1xf32>
    %cst_110 = arith.constant 1.000000e+00 : f32
    %348 = vector.broadcast %cst_110 : f32 to vector<8x1xf32>
    %349 = arith.divf %348, %347 : vector<8x1xf32>
    %350 = vector.broadcast %349 : vector<8x1xf32> to vector<8x8xf32>
    %351 = arith.mulf %342, %350 : vector<8x8xf32>
    %352 = arith.mulf %344, %349 : vector<8x1xf32>
    %353 = arith.truncf %351 : vector<8x8xf32> to vector<8x8xbf16>
    %354 = vector.extract_strided_slice %249 {offsets = [0, 16], sizes = [8, 8], strides = [1, 1]} : vector<8x32xbf16> to vector<8x8xbf16>
    %cst_111 = arith.constant dense<0.000000e+00> : vector<8x8xf32>
    %355 = tpu.matmul %353, %354, %cst_111 {dimension_numbers = #tpu.dot_dimension_numbers<[1], [0], [0], [1], [0, 0, 1, 1], [], []>} : vector<8x8xbf16>, vector<8x8xbf16>, vector<8x8xf32> -> vector<8x8xf32>
    %356 = vector.extract_strided_slice %251 {offsets = [0, 16], sizes = [1, 8], strides = [1, 1]} : vector<1x32xf32> to vector<1x8xf32>
    %357 = vector.broadcast %352 : vector<8x1xf32> to vector<8x8xf32>
    %358 = vector.broadcast %356 : vector<1x8xf32> to vector<8x8xf32>
    %359 = arith.mulf %357, %358 : vector<8x8xf32>
    %360 = arith.addf %355, %359 : vector<8x8xf32>
    %361 = arith.truncf %360 : vector<8x8xf32> to vector<8x8xbf16>
    %c0_112 = arith.constant 0 : index
    %c16_113 = arith.constant 16 : index
    %362 = vector.load %arg23[%c0_112, %c16_113] : memref<8x32xbf16, #tpu.memory_space<vmem>>, vector<8x8xbf16>
    tpu.vector_store %arg23[%c0_112, %c16_113], %361 {strides = array<i32>} : memref<8x32xbf16, #tpu.memory_space<vmem>>, vector<8x8xbf16>,
    %363 = arith.addf %326, %351 : vector<8x8xf32>
    %364 = arith.addf %327, %352 : vector<8x1xf32>
    %365 = vector.extract_strided_slice %247 {offsets = [0, 24], sizes = [8, 8], strides = [1, 1]} : vector<8x32xbf16> to vector<8x8xbf16>
    %366 = vector.extract_strided_slice %248 {offsets = [0, 24], sizes = [8, 8], strides = [1, 1]} : vector<8x32xbf16> to vector<8x8xbf16>
    %cst_114 = arith.constant dense<0.000000e+00> : vector<8x8xf32>
    %367 = tpu.matmul %365, %366, %cst_114 {dimension_numbers = #tpu.dot_dimension_numbers<[1], [1], [0], [0], [0, 0, 1, 0], [], []>} : vector<8x8xbf16>, vector<8x8xbf16>, vector<8x8xf32> -> vector<8x8xf32>
    %368 = vector.extract_strided_slice %238 {offsets = [0, 24], sizes = [8, 8], strides = [1, 1]} : vector<8x32xf32> to vector<8x8xf32>
    %369 = vector.extract_strided_slice %250 {offsets = [0, 24], sizes = [1, 8], strides = [1, 1]} : vector<1x32xf32> to vector<1x8xf32>
    %370 = vector.broadcast %369 : vector<1x8xf32> to vector<8x8xf32>
    %371 = arith.mulf %368, %370 : vector<8x8xf32>
    %cst_115 = arith.constant dense<0.000000e+00> : vector<8xf32>
    %372 = vector.multi_reduction <add>, %371, %cst_115 [1] : vector<8x8xf32> to vector<8xf32>
    %373 = vector.shape_cast %372 : vector<8xf32> to vector<8x1xf32>
    %cst_116 = arith.constant dense<0xFF800000> : vector<8xf32>
    %374 = vector.multi_reduction <maximumf>, %367, %cst_116 [1] : vector<8x8xf32> to vector<8xf32>
    %375 = vector.shape_cast %374 : vector<8xf32> to vector<8x1xf32>
    %376 = arith.maximumf %375, %373 : vector<8x1xf32>
    %377 = vector.broadcast %376 : vector<8x1xf32> to vector<8x8xf32>
    %378 = arith.subf %367, %377 : vector<8x8xf32>
    %379 = math.exp %378 : vector<8x8xf32>
    %380 = arith.subf %373, %376 : vector<8x1xf32>
    %381 = math.exp %380 : vector<8x1xf32>
    %cst_117 = arith.constant dense<0.000000e+00> : vector<8xf32>
    %382 = vector.multi_reduction <add>, %379, %cst_117 [1] : vector<8x8xf32> to vector<8xf32>
    %383 = vector.shape_cast %382 : vector<8xf32> to vector<8x1xf32>
    %384 = arith.addf %383, %381 : vector<8x1xf32>
    %cst_118 = arith.constant 1.000000e+00 : f32
    %385 = vector.broadcast %cst_118 : f32 to vector<8x1xf32>
    %386 = arith.divf %385, %384 : vector<8x1xf32>
    %387 = vector.broadcast %386 : vector<8x1xf32> to vector<8x8xf32>
    %388 = arith.mulf %379, %387 : vector<8x8xf32>
    %389 = arith.mulf %381, %386 : vector<8x1xf32>
    %390 = arith.truncf %388 : vector<8x8xf32> to vector<8x8xbf16>
    %391 = vector.extract_strided_slice %249 {offsets = [0, 24], sizes = [8, 8], strides = [1, 1]} : vector<8x32xbf16> to vector<8x8xbf16>
    %cst_119 = arith.constant dense<0.000000e+00> : vector<8x8xf32>
    %392 = tpu.matmul %390, %391, %cst_119 {dimension_numbers = #tpu.dot_dimension_numbers<[1], [0], [0], [1], [0, 0, 1, 1], [], []>} : vector<8x8xbf16>, vector<8x8xbf16>, vector<8x8xf32> -> vector<8x8xf32>
    %393 = vector.extract_strided_slice %251 {offsets = [0, 24], sizes = [1, 8], strides = [1, 1]} : vector<1x32xf32> to vector<1x8xf32>
    %394 = vector.broadcast %389 : vector<8x1xf32> to vector<8x8xf32>
    %395 = vector.broadcast %393 : vector<1x8xf32> to vector<8x8xf32>
    %396 = arith.mulf %394, %395 : vector<8x8xf32>
    %397 = arith.addf %392, %396 : vector<8x8xf32>
    %398 = arith.truncf %397 : vector<8x8xf32> to vector<8x8xbf16>
    %c0_120 = arith.constant 0 : index
    %c24_121 = arith.constant 24 : index
    %399 = vector.load %arg23[%c0_120, %c24_121] : memref<8x32xbf16, #tpu.memory_space<vmem>>, vector<8x8xbf16>
    tpu.vector_store %arg23[%c0_120, %c24_121], %398 {strides = array<i32>} : memref<8x32xbf16, #tpu.memory_space<vmem>>, vector<8x8xbf16>,
    %400 = arith.addf %363, %388 : vector<8x8xf32>
    %401 = arith.addf %364, %389 : vector<8x1xf32>
    %c0_122 = arith.constant 0 : index
    %c0_123 = arith.constant 0 : index
    %402 = vector.load %arg23[%c0_122, %c0_123] : memref<8x32xbf16, #tpu.memory_space<vmem>>, vector<8x32xbf16>
    %c0_124 = arith.constant 0 : index
    %c0_125 = arith.constant 0 : index
    %403 = vector.load %arg14[%c0_124, %c0_125] : memref<32x32xbf16, #tpu.memory_space<vmem>>, vector<32x32xbf16>
    %cst_126 = arith.constant dense<0.000000e+00> : vector<8x32xf32>
    %404 = tpu.matmul %402, %403, %cst_126 {dimension_numbers = #tpu.dot_dimension_numbers<[1], [0], [0], [1], [0, 0, 1, 1], [], []>} : vector<8x32xbf16>, vector<32x32xbf16>, vector<8x32xf32> -> vector<8x32xf32>
    %c0_127 = arith.constant 0 : index
    %c0_128 = arith.constant 0 : index
    %405 = vector.load %arg15[%c0_127, %c0_128] : memref<1x32xf32, #tpu.memory_space<vmem>>, vector<1x32xf32>
    %406 = vector.broadcast %405 : vector<1x32xf32> to vector<8x32xf32>
    %407 = arith.addf %404, %406 : vector<8x32xf32>
    %cst_129 = arith.constant 2.500000e-01 : f32
    %408 = vector.broadcast %cst_129 : f32 to vector<8x8xf32>
    %409 = arith.mulf %400, %408 : vector<8x8xf32>
    %c0_130 = arith.constant 0 : index
    %c0_131 = arith.constant 0 : index
    %c0_132 = arith.constant 0 : index
    %410 = vector.load %arg22[%c0_130, %c0_131, %c0_132] : memref<1x8x9xf32, #tpu.memory_space<vmem>>, vector<1x8x8xf32>
    %411 = vector.shape_cast %410 : vector<1x8x8xf32> to vector<8x8xf32>
    %412 = vector.shape_cast %409 : vector<8x8xf32> to vector<1x8x8xf32>
    tpu.vector_store %arg22[%c0_130, %c0_131, %c0_132], %412 {strides = array<i32>} : memref<1x8x9xf32, #tpu.memory_space<vmem>>, vector<1x8x8xf32>,
    %cst_133 = arith.constant 2.500000e-01 : f32
    %413 = vector.broadcast %cst_133 : f32 to vector<8x1xf32>
    %414 = arith.mulf %401, %413 : vector<8x1xf32>
    %c0_134 = arith.constant 0 : index
    %c0_135 = arith.constant 0 : index
    %c8_136 = arith.constant 8 : index
    %415 = vector.load %arg22[%c0_134, %c0_135, %c8_136] : memref<1x8x9xf32, #tpu.memory_space<vmem>>, vector<1x8x1xf32>
    %416 = vector.shape_cast %415 : vector<1x8x1xf32> to vector<8x1xf32>
    %417 = vector.shape_cast %414 : vector<8x1xf32> to vector<1x8x1xf32>
    tpu.vector_store %arg22[%c0_134, %c0_135, %c8_136], %417 {strides = array<i32>} : memref<1x8x9xf32, #tpu.memory_space<vmem>>, vector<1x8x1xf32>,
    %418 = arith.addf %208, %407 : vector<8x32xf32>
    %c4 = arith.constant 4 : index
    %c0_137 = arith.constant 0 : index
    %419 = vector.load %arg3[%c4, %c0_137] : memref<8x32xf32, #tpu.memory_space<vmem>>, vector<1x32xf32>
    %c5 = arith.constant 5 : index
    %c0_138 = arith.constant 0 : index
    %420 = vector.load %arg3[%c5, %c0_138] : memref<8x32xf32, #tpu.memory_space<vmem>>, vector<1x32xf32>
    %cst_139 = arith.constant dense<0.000000e+00> : vector<8xf32>
    %421 = vector.multi_reduction <add>, %418, %cst_139 [1] : vector<8x32xf32> to vector<8xf32>
    %422 = vector.shape_cast %421 : vector<8xf32> to vector<8x1xf32>
    %cst_140 = arith.constant 3.200000e+01 : f32
    %423 = vector.broadcast %cst_140 : f32 to vector<8x1xf32>
    %424 = arith.divf %422, %423 : vector<8x1xf32>
    %425 = vector.broadcast %424 : vector<8x1xf32> to vector<8x32xf32>
    %426 = arith.subf %418, %425 : vector<8x32xf32>
    %427 = arith.mulf %426, %426 : vector<8x32xf32>
    %cst_141 = arith.constant dense<0.000000e+00> : vector<8xf32>
    %428 = vector.multi_reduction <add>, %427, %cst_141 [1] : vector<8x32xf32> to vector<8xf32>
    %429 = vector.shape_cast %428 : vector<8xf32> to vector<8x1xf32>
    %cst_142 = arith.constant 3.200000e+01 : f32
    %430 = vector.broadcast %cst_142 : f32 to vector<8x1xf32>
    %431 = arith.divf %429, %430 : vector<8x1xf32>
    %432 = vector.broadcast %424 : vector<8x1xf32> to vector<8x32xf32>
    %433 = arith.subf %418, %432 : vector<8x32xf32>
    %cst_143 = arith.constant 9.99999974E-6 : f32
    %434 = vector.broadcast %cst_143 : f32 to vector<8x1xf32>
    %435 = arith.addf %431, %434 : vector<8x1xf32>
    %436 = math.rsqrt %435 : vector<8x1xf32>
    %437 = vector.broadcast %436 : vector<8x1xf32> to vector<8x32xf32>
    %438 = arith.mulf %433, %437 : vector<8x32xf32>
    %439 = vector.broadcast %419 : vector<1x32xf32> to vector<8x32xf32>
    %440 = arith.mulf %438, %439 : vector<8x32xf32>
    %441 = vector.broadcast %420 : vector<1x32xf32> to vector<8x32xf32>
    %442 = arith.addf %440, %441 : vector<8x32xf32>
    %443 = arith.truncf %442 : vector<8x32xf32> to vector<8x32xbf16>
    %c0_144 = arith.constant 0 : index
    %c0_145 = arith.constant 0 : index
    %444 = vector.load %arg16[%c0_144, %c0_145] : memref<32x64xbf16, #tpu.memory_space<vmem>>, vector<32x64xbf16>
    %cst_146 = arith.constant dense<0.000000e+00> : vector<8x64xf32>
    %445 = tpu.matmul %443, %444, %cst_146 {dimension_numbers = #tpu.dot_dimension_numbers<[1], [0], [0], [1], [0, 0, 1, 1], [], []>} : vector<8x32xbf16>, vector<32x64xbf16>, vector<8x64xf32> -> vector<8x64xf32>
    %c0_147 = arith.constant 0 : index
    %c0_148 = arith.constant 0 : index
    %446 = vector.load %arg17[%c0_147, %c0_148] : memref<1x64xf32, #tpu.memory_space<vmem>>, vector<1x64xf32>
    %447 = vector.broadcast %446 : vector<1x64xf32> to vector<8x64xf32>
    %448 = arith.addf %445, %447 : vector<8x64xf32>
    %cst_149 = arith.constant 0.000000e+00 : f32
    %449 = vector.broadcast %cst_149 : f32 to vector<8x64xf32>
    %450 = arith.maximumf %448, %449 : vector<8x64xf32>
    %451 = arith.truncf %450 : vector<8x64xf32> to vector<8x64xbf16>
    %c0_150 = arith.constant 0 : index
    %c0_151 = arith.constant 0 : index
    %452 = vector.load %arg18[%c0_150, %c0_151] : memref<64x32xbf16, #tpu.memory_space<vmem>>, vector<64x32xbf16>
    %cst_152 = arith.constant dense<0.000000e+00> : vector<8x32xf32>
    %453 = tpu.matmul %451, %452, %cst_152 {dimension_numbers = #tpu.dot_dimension_numbers<[1], [0], [0], [1], [0, 0, 1, 1], [], []>} : vector<8x64xbf16>, vector<64x32xbf16>, vector<8x32xf32> -> vector<8x32xf32>
    %c0_153 = arith.constant 0 : index
    %c0_154 = arith.constant 0 : index
    %454 = vector.load %arg19[%c0_153, %c0_154] : memref<1x32xf32, #tpu.memory_space<vmem>>, vector<1x32xf32>
    %455 = vector.broadcast %454 : vector<1x32xf32> to vector<8x32xf32>
    %456 = arith.addf %453, %455 : vector<8x32xf32>
    %457 = arith.addf %418, %456 : vector<8x32xf32>
    %c6 = arith.constant 6 : index
    %c0_155 = arith.constant 0 : index
    %458 = vector.load %arg3[%c6, %c0_155] : memref<8x32xf32, #tpu.memory_space<vmem>>, vector<1x32xf32>
    %c7 = arith.constant 7 : index
    %c0_156 = arith.constant 0 : index
    %459 = vector.load %arg3[%c7, %c0_156] : memref<8x32xf32, #tpu.memory_space<vmem>>, vector<1x32xf32>
    %cst_157 = arith.constant dense<0.000000e+00> : vector<8xf32>
    %460 = vector.multi_reduction <add>, %457, %cst_157 [1] : vector<8x32xf32> to vector<8xf32>
    %461 = vector.shape_cast %460 : vector<8xf32> to vector<8x1xf32>
    %cst_158 = arith.constant 3.200000e+01 : f32
    %462 = vector.broadcast %cst_158 : f32 to vector<8x1xf32>
    %463 = arith.divf %461, %462 : vector<8x1xf32>
    %464 = vector.broadcast %463 : vector<8x1xf32> to vector<8x32xf32>
    %465 = arith.subf %457, %464 : vector<8x32xf32>
    %466 = arith.mulf %465, %465 : vector<8x32xf32>
    %cst_159 = arith.constant dense<0.000000e+00> : vector<8xf32>
    %467 = vector.multi_reduction <add>, %466, %cst_159 [1] : vector<8x32xf32> to vector<8xf32>
    %468 = vector.shape_cast %467 : vector<8xf32> to vector<8x1xf32>
    %cst_160 = arith.constant 3.200000e+01 : f32
    %469 = vector.broadcast %cst_160 : f32 to vector<8x1xf32>
    %470 = arith.divf %468, %469 : vector<8x1xf32>
    %471 = vector.broadcast %463 : vector<8x1xf32> to vector<8x32xf32>
    %472 = arith.subf %457, %471 : vector<8x32xf32>
    %cst_161 = arith.constant 9.99999974E-6 : f32
    %473 = vector.broadcast %cst_161 : f32 to vector<8x1xf32>
    %474 = arith.addf %470, %473 : vector<8x1xf32>
    %475 = math.rsqrt %474 : vector<8x1xf32>
    %476 = vector.broadcast %475 : vector<8x1xf32> to vector<8x32xf32>
    %477 = arith.mulf %472, %476 : vector<8x32xf32>
    %478 = vector.broadcast %458 : vector<1x32xf32> to vector<8x32xf32>
    %479 = arith.mulf %477, %478 : vector<8x32xf32>
    %480 = vector.broadcast %459 : vector<1x32xf32> to vector<8x32xf32>
    %481 = arith.addf %479, %480 : vector<8x32xf32>
    %c0_162 = arith.constant 0 : index
    %c0_163 = arith.constant 0 : index
    %c0_164 = arith.constant 0 : index
    %482 = vector.load %arg20[%c0_162, %c0_163, %c0_164] : memref<1x8x32xf32, #tpu.memory_space<vmem>>, vector<1x8x32xf32>
    %483 = vector.shape_cast %482 : vector<1x8x32xf32> to vector<8x32xf32>
    %484 = vector.shape_cast %481 : vector<8x32xf32> to vector<1x8x32xf32>
    tpu.vector_store %arg20[%c0_162, %c0_163, %c0_164], %484 {strides = array<i32>} : memref<1x8x32xf32, #tpu.memory_space<vmem>>, vector<1x8x32xf32>,
    return
  }
  func.func @transform_0(%arg0: i32) -> (i32, i32, i32) {
    %c0_i32 = arith.constant 0 : i32
    %c0_i32_0 = arith.constant 0 : i32
    %c0_i32_1 = arith.constant 0 : i32
    return %arg0, %c0_i32, %c0_i32_0 : i32, i32, i32
  }
  func.func @transform_1(%arg0: i32) -> (i32, i32, i32) {
    %c0_i32 = arith.constant 0 : i32
    %c0_i32_0 = arith.constant 0 : i32
    %c0_i32_1 = arith.constant 0 : i32
    return %arg0, %c0_i32, %c0_i32_0 : i32, i32, i32
  }
  func.func @transform_2(%arg0: i32) -> (i32, i32) {
    %c0_i32 = arith.constant 0 : i32
    %c0_i32_0 = arith.constant 0 : i32
    %c0_i32_1 = arith.constant 0 : i32
    return %c0_i32, %c0_i32_0 : i32, i32
  }
  func.func @transform_3(%arg0: i32) -> (i32, i32) {
    %c0_i32 = arith.constant 0 : i32
    %c0_i32_0 = arith.constant 0 : i32
    %c0_i32_1 = arith.constant 0 : i32
    return %c0_i32, %c0_i32_0 : i32, i32
  }
  func.func @transform_4(%arg0: i32) -> (i32, i32) {
    %c0_i32 = arith.constant 0 : i32
    %c0_i32_0 = arith.constant 0 : i32
    %c0_i32_1 = arith.constant 0 : i32
    return %c0_i32, %c0_i32_0 : i32, i32
  }
  func.func @transform_5(%arg0: i32) -> (i32, i32) {
    %c0_i32 = arith.constant 0 : i32
    %c0_i32_0 = arith.constant 0 : i32
    %c0_i32_1 = arith.constant 0 : i32
    return %c0_i32, %c0_i32_0 : i32, i32
  }
  func.func @transform_6(%arg0: i32) -> (i32, i32) {
    %c0_i32 = arith.constant 0 : i32
    %c0_i32_0 = arith.constant 0 : i32
    %c0_i32_1 = arith.constant 0 : i32
    return %c0_i32, %c0_i32_0 : i32, i32
  }
  func.func @transform_7(%arg0: i32) -> (i32, i32) {
    %c0_i32 = arith.constant 0 : i32
    %c0_i32_0 = arith.constant 0 : i32
    %c0_i32_1 = arith.constant 0 : i32
    return %c0_i32, %c0_i32_0 : i32, i32
  }
  func.func @transform_8(%arg0: i32) -> (i32, i32) {
    %c0_i32 = arith.constant 0 : i32
    %c0_i32_0 = arith.constant 0 : i32
    %c0_i32_1 = arith.constant 0 : i32
    return %c0_i32, %c0_i32_0 : i32, i32
  }
  func.func @transform_9(%arg0: i32) -> (i32, i32) {
    %c0_i32 = arith.constant 0 : i32
    %c0_i32_0 = arith.constant 0 : i32
    %c0_i32_1 = arith.constant 0 : i32
    return %c0_i32, %c0_i32_0 : i32, i32
  }
  func.func @transform_10(%arg0: i32) -> (i32, i32) {
    %c0_i32 = arith.constant 0 : i32
    %c0_i32_0 = arith.constant 0 : i32
    %c0_i32_1 = arith.constant 0 : i32
    return %c0_i32, %c0_i32_0 : i32, i32
  }
  func.func @transform_11(%arg0: i32) -> (i32, i32) {
    %c0_i32 = arith.constant 0 : i32
    %c0_i32_0 = arith.constant 0 : i32
    %c0_i32_1 = arith.constant 0 : i32
    return %c0_i32, %c0_i32_0 : i32, i32
  }
  func.func @transform_12(%arg0: i32) -> (i32, i32) {
    %c0_i32 = arith.constant 0 : i32
    %c0_i32_0 = arith.constant 0 : i32
    %c0_i32_1 = arith.constant 0 : i32
    return %c0_i32, %c0_i32_0 : i32, i32
  }
  func.func @transform_13(%arg0: i32) -> (i32, i32) {
    %c0_i32 = arith.constant 0 : i32
    %c0_i32_0 = arith.constant 0 : i32
    %c0_i32_1 = arith.constant 0 : i32
    return %c0_i32, %c0_i32_0 : i32, i32
  }
  func.func @transform_14(%arg0: i32) -> (i32, i32) {
    %c0_i32 = arith.constant 0 : i32
    %c0_i32_0 = arith.constant 0 : i32
    %c0_i32_1 = arith.constant 0 : i32
    return %c0_i32, %c0_i32_0 : i32, i32
  }
  func.func @transform_15(%arg0: i32) -> (i32, i32) {
    %c0_i32 = arith.constant 0 : i32
    %c0_i32_0 = arith.constant 0 : i32
    %c0_i32_1 = arith.constant 0 : i32
    return %c0_i32, %c0_i32_0 : i32, i32
  }
  func.func @transform_16(%arg0: i32) -> (i32, i32) {
    %c0_i32 = arith.constant 0 : i32
    %c0_i32_0 = arith.constant 0 : i32
    %c0_i32_1 = arith.constant 0 : i32
    return %c0_i32, %c0_i32_0 : i32, i32
  }
  func.func @transform_17(%arg0: i32) -> (i32, i32) {
    %c0_i32 = arith.constant 0 : i32
    %c0_i32_0 = arith.constant 0 : i32
    %c0_i32_1 = arith.constant 0 : i32
    return %c0_i32, %c0_i32_0 : i32, i32
  }
  func.func @transform_18(%arg0: i32) -> (i32, i32) {
    %c0_i32 = arith.constant 0 : i32
    %c0_i32_0 = arith.constant 0 : i32
    %c0_i32_1 = arith.constant 0 : i32
    return %c0_i32, %c0_i32_0 : i32, i32
  }
  func.func @transform_19(%arg0: i32) -> (i32, i32, i32) {
    %c0_i32 = arith.constant 0 : i32
    %c0_i32_0 = arith.constant 0 : i32
    %c0_i32_1 = arith.constant 0 : i32
    return %arg0, %c0_i32, %c0_i32_0 : i32, i32, i32
  }
  func.func @transform_20(%arg0: i32) -> (i32, i32, i32) {
    %c0_i32 = arith.constant 0 : i32
    %c0_i32_0 = arith.constant 0 : i32
    %c0_i32_1 = arith.constant 0 : i32
    return %arg0, %c0_i32, %c0_i32_0 : i32, i32, i32
  }
  func.func @transform_21(%arg0: i32) -> (i32, i32, i32) {
    %c0_i32 = arith.constant 0 : i32
    %c0_i32_0 = arith.constant 0 : i32
    %c0_i32_1 = arith.constant 0 : i32
    return %arg0, %c0_i32, %c0_i32_0 : i32, i32, i32
  }
}

</mosaic_0001>

<bundles_post_ra>
// kernel: miso_decoder_layer.1
= control target key start
LH: loop header
LB: loop body
LE: loop exit
PB: predicated region body
PF: predicated region fallthrough
CT: control target
= control target key end

     0   :  { %s3570_s0 = inlined_call_operand.vmem [shape: f32[2,8,32], index: 0, kind: input, shape index: {}]   ;;  %s3571_s1 = inlined_call_operand.vmem [shape: f32[2,8,32], index: 1, kind: input, shape index: {}]   ;;  %s3572_s2 = inlined_call_operand.vmem [shape: f32[8,32], index: 2, kind: input, shape index: {}]   ;;  %s3573_s3 = inlined_call_operand.vmem [shape: bf16[32,96], index: 3, kind: input, shape index: {}]   ;;  %s3574_s4 = inlined_call_operand.vmem [shape: f32[1,96], index: 4, kind: input, shape index: {}]   ;;  %s3575_s5 = inlined_call_operand.hbm [shape: f32[2,32], index: 5, kind: input, shape index: {}]   ;;  %s3576_s6 = inlined_call_operand.vmem [shape: bf16[32,32], index: 6, kind: input, shape index: {}]   ;;  %s3577_s7 = inlined_call_operand.hbm [shape: f32[1,32], index: 7, kind: input, shape index: {}]   ;;  %s3578_s8 = inlined_call_operand.vmem [shape: bf16[32,32], index: 8, kind: input, shape index: {}]   ;;  %s3579_s9 = inlined_call_operand.hbm [shape: f32[1,32], index: 9, kind: input, shape index: {}]   ;;  %s3580_s10 = inlined_call_operand.vmem [shape: bf16[32,64], index: 10, kind: input, shape index: {}]   ;;  %s3581_s11 = inlined_call_operand.hbm [shape: f32[1,64], index: 11, kind: input, shape index: {}]   ;;  %s3582_s12 = inlined_call_operand.hbm [shape: f32[2,32], index: 12, kind: input, shape index: {}]   ;;  %s3583_s13 = inlined_call_operand.vmem [shape: bf16[32,32], index: 13, kind: input, shape index: {}]   ;;  %s3584_s14 = inlined_call_operand.hbm [shape: f32[1,32], index: 14, kind: input, shape index: {}]   ;;  %s3585_s15 = inlined_call_operand.vmem [shape: bf16[32,64], index: 15, kind: input, shape index: {}]   ;;  %s3586_s16 = inlined_call_operand.hbm [shape: f32[1,64], index: 16, kind: input, shape index: {}]   ;;  %s3587_s17 = inlined_call_operand.vmem [shape: bf16[64,32], index: 17, kind: input, shape index: {}]   ;;  %s3588_s18 = inlined_call_operand.hbm [shape: f32[1,32], index: 18, kind: input, shape index: {}]   ;;  %s3589_s19 = inlined_call_operand.vmem [shape: f32[2,8,32], index: 19, kind: output, shape index: {0}]   ;;  %s3590_s20 = inlined_call_operand.hbm [shape: f32[2,8,9], index: 20, kind: output, shape index: {1}]   ;;  %s3591_s21 = inlined_call_operand.hbm [shape: f32[2,8,9], index: 21, kind: output, shape index: {2}]  }
   0x1   :  { %3608 = sst [smem:[#allocation33_spill]] %s3570_s0 }
   0x2   :  { %3609 = sst [smem:[#allocation34_spill]] %s3571_s1 }
   0x3   :  { %3610 = sst [smem:[#allocation35_spill]] %s3572_s2 }
   0x4   :  { %3611 = sst [smem:[#allocation36_spill]] %s3573_s3 }
   0x5   :  { %3612 = sst [smem:[#allocation37_spill]] %s3574_s4 }
   0x6   :  { %3613 = sst [smem:[#allocation38_spill]] %s3575_s5 }
   0x7   :  { %3614 = sst [smem:[#allocation39_spill]] %s3576_s6 }
   0x8   :  { %3615 = sst [smem:[#allocation40_spill]] %s3577_s7 }
   0x9   :  { %3616 = sst [smem:[#allocation41_spill]] %s3578_s8 }
   0xa   :  { %3617 = sst [smem:[#allocation42_spill]] %s3579_s9 }
   0xb   :  { %3618 = sst [smem:[#allocation43_spill]] %s3580_s10 }
   0xc   :  { %3619 = sst [smem:[#allocation44_spill]] %s3581_s11 }
   0xd   :  { %3620 = sst [smem:[#allocation45_spill]] %s3582_s12 }
   0xe   :  { %3621 = sst [smem:[#allocation46_spill]] %s3584_s14 }
   0xf   :  { %3622 = sst [smem:[#allocation47_spill]] %s3589_s19 }
  0x10   :  { %3623 = sst [smem:[#allocation48_spill]] %s3591_s21 }
  0x11   :  { %27 = vsyncpa [#allocation4], 0 }
  0x12   :  { %28 = vsyncpa [#allocation7], 0 }
  0x13   :  { %29 = vsyncpa [#allocation10], 0 }
  0x14   :  { %30 = vsyncpa [#allocation13], 0 }
  0x15   :  { %31 = vsyncpa [#allocation16], 0 }
  0x16   :  { %32 = vsyncpa [#allocation5], 0 }
  0x17   :  { %34 = vsyncpa [#allocation5 + $0x1], 0 }
  0x18   :  { %35 = vsyncpa [#allocation19], 0 }
  0x19   :  { %37 = vsyncpa [#allocation19 + $0x1], 0  ;;  %s3071_s2 = smov 0   ;;  %s3073_s25 = smov 0  }
  0x1a   :  { %s3075_s26 = smov 0   ;;  %s3077_s27 = smov 0  }
  0x1b LB: > { %3624 = sst [smem:[#allocation27_spill]] %s2924_s2  ;;  %s3092_s3 = sadd.s32 4294967295, %s2936_s27   ;;  %s2936_s27 = sphi %s3077_s27, %s3664_s27   ;;  %s2932_s26 = sphi %s3075_s26, %s3666_s26   ;;  %s2928_s25 = sphi %s3073_s25, %s3668_s25   ;;  %s2924_s2 = sphi %s3071_s2, %s3667_s2  }
  0x1c   : > { %3625 = sst [smem:[#allocation28_spill]] %s2932_s26  ;;  %s2231_s28 = sadd.s32 4294967294, %s2936_s27  }
  0x1d   : > { %3626 = sst [smem:[#allocation29_spill]] %s2936_s27  ;;  %s3096_s29 = sadd.s32 1, %s2936_s27  }
  0x1e   : > { %3627 = sst [smem:[#allocation30_spill]] %s3096_s29  ;;  %s485_s0 = sadd.s32 1, %s2932_s26 }
  0x1f   : > { %s482_s4 = ssub.s32 %s2936_s27, %s3096_s29  ;;  %p495_p0 = scmp.ne.s32.totalorder %s2932_s26, %s2928_s25 }
  0x20   : > { %p483_p1 = scmp.eq.s32.totalorder %s482_s4, 0  ;;  %p496_p2 = scmp.eq.s32.totalorder %s3092_s3, 1 }
  0x21   : > { %p501_p3 = scmp.ne.s32.totalorder %s2928_s25, %s2924_s2  ;;  %p502_p4 = scmp.eq.s32.totalorder %s2231_s28, 1 }
  0x22   : > { %s3107_s30 = scalar_select %p483_p1, %s2932_s26, %s485_s0  }
  0x23   : > { %p3109_p5 = por %p496_p2, %p495_p0  ;;  %p3113_p6 = por %p502_p4, %p501_p3 }
  0x24   : > { %3628 = sst [smem:[#allocation31_spill]] %s3107_s30  ;;  %p2232_p7 = scmp.ge.s32.totalorder %s2936_s27, 1 }
  0x25   : > { %s3630_s22 = scalar_select %p3113_p6, 1, 0 }
  0x26   : > { %p535_p8 = scmp.lt.s32.totalorder %s2936_s27, 3  ;;  %p2433_p9 = scmp.eq.s32.totalorder %s3092_s3, 0 }
  0x27   : > { %3631 = sst [smem:[#allocation32_spill]] %s3630_s22  ;;  %s2938_s0 = smov [#allocation6]  }
  0x28   : > { %p3120_p10 = pnand %p2232_p7, %p535_p8  ;;  %s3633_s7 = sld [smem:[#allocation40_spill]] }
  0x29   : > { %s573_s4 = sshll.u32 %s2938_s0, 4  ;;  %s3634_s11 = sld [smem:[#allocation44_spill]]  ;;  %s574_s4 = int_to_ptr.vmem [resolvable:$true] %s573_s4 }
  0x2a   : > { %p2401_p11 = pneg %p3120_p10  ;;  %s3636_s14 = sld [smem:[#allocation46_spill]] }
  0x2b   : > { %s2939_s2 = smov [#allocation9]   ;;  %s2940_s19 = smov [#allocation12]  }
  0x2c   : > { %p3134_p12 = pnand %p2433_p9, %p2401_p11  ;;  %s603_s0 = sshll.u32 %s2939_s2, 4  ;;  %s604_s0 = int_to_ptr.vmem [resolvable:$true] %s603_s0 }
  0x2d   : > { %s630_s21 = sshll.u32 %s2940_s19, 4  ;;  %s2941_s1 = smov [#allocation3]   ;;  %s631_s21 = int_to_ptr.vmem [resolvable:$true] %s630_s21 }
  0x2e   : > { %s571_s28 = sshll.u32 %s3633_s7, 4  ;;  %s558_s2 = sshll.u32 %s2941_s1, 4  ;;  %s572_s28 = int_to_ptr.hbm [resolvable:$true] %s571_s28  ;;  %s559_s2 = int_to_ptr.vmem [resolvable:$true] %s558_s2 }
  0x2f   : > { %s601_s29 = sshll.u32 %s3634_s11, 4  ;;  %s3637_s11 = sld [smem:[#allocation38_spill]]  ;;  %s602_s29 = int_to_ptr.hbm [resolvable:$true] %s601_s29 }
  0x30   : > { %s628_s7 = sshll.u32 %s3636_s14, 4  ;;  %s3638_s9 = sld [smem:[#allocation42_spill]]  ;;  %s629_s7 = int_to_ptr.hbm [resolvable:$true] %s628_s7 }
  0x31   : > { %2407 = dma.hbm_to_vmem [thread:$0]  (!%p3134_p12), %s572_s28, 16, %s574_s4, [#allocation7]  }
  0x32   : > { %2413 = dma.hbm_to_vmem [thread:$0]  (!%p3134_p12), %s602_s29, 16, %s604_s0, [#allocation10]  }
  0x33   : > { %2419 = dma.hbm_to_vmem [thread:$0]  (!%p3134_p12), %s629_s7, 16, %s631_s21, [#allocation13]  }
  0x34   : > { %s3639_s12 = sld [smem:[#allocation45_spill]]  ;;  %s2942_s19 = smov [#allocation8]  }
  0x35   : > { %s556_s27 = sshll.u32 %s3637_s11, 4  ;;  %s588_s0 = sshll.u32 %s2942_s19, 4  ;;  %s557_s27 = int_to_ptr.hbm [resolvable:$true] %s556_s27  ;;  %s589_s0 = int_to_ptr.vmem [resolvable:$true] %s588_s0 }
  0x36   : > { %s586_s28 = sshll.u32 %s3638_s9, 4  ;;  %s2943_s7 = smov [#allocation11]   ;;  %s587_s28 = int_to_ptr.hbm [resolvable:$true] %s586_s28 }
  0x37   : > { %2404 = dma.hbm_to_vmem [thread:$0]  (!%p3134_p12), %s557_s27, 32, %s559_s2, [#allocation4]  }
  0x38   : > { %2410 = dma.hbm_to_vmem [thread:$0]  (!%p3134_p12), %s587_s28, 16, %s589_s0, [#allocation7]  }
  0x39   : > { %s615_s14 = sshll.u32 %s2943_s7, 4  ;;  %s643_s30 = sshll.u32 %s3586_s16, 4  ;;  %s616_s14 = int_to_ptr.vmem [resolvable:$true] %s615_s14  ;;  %s644_s30 = int_to_ptr.hbm [resolvable:$true] %s643_s30 }
  0x3a   : > { %s613_s4 = sshll.u32 %s3639_s12, 4  ;;  %s658_s2 = sshll.u32 %s3588_s18, 4  ;;  %s614_s4 = int_to_ptr.hbm [resolvable:$true] %s613_s4  ;;  %s659_s2 = int_to_ptr.hbm [resolvable:$true] %s658_s2 }
  0x3b   : > { %2416 = dma.hbm_to_vmem [thread:$0]  (!%p3134_p12), %s614_s4, 32, %s616_s14, [#allocation10]  }
  0x3c   : > { %s2944_s24 = smov [#allocation14]   ;;  %s2945_s28 = smov [#allocation15]  }
  0x3d   : > { %s645_s29 = sshll.u32 %s2944_s24, 4  ;;  %s660_s11 = sshll.u32 %s2945_s28, 4  ;;  %s646_s29 = int_to_ptr.vmem [resolvable:$true] %s645_s29  ;;  %s661_s11 = int_to_ptr.vmem [resolvable:$true] %s660_s11 }
  0x3e   : > { %2422 = dma.hbm_to_vmem [thread:$0]  (!%p3134_p12), %s644_s30, 16, %s646_s29, [#allocation13]  }
  0x3f   : > { %2425 = dma.hbm_to_vmem [thread:$0]  (!%p3134_p12), %s659_s2, 16, %s661_s11, [#allocation16]  }
  0x40   : > { %687 = sbr.rel (%p3120_p10) target bundleno = 3577 (0xdf9), region = 96 }
  0x45   : > { %2895 = dma.done.wait (%p2433_p9), [#allocation4], 32  }
  0x46   : > { %2897 = vsyncadd (%p2433_p9), [#allocation4], 4294967264 }
  0x47   : > { %2899 = dma.done.wait (%p2433_p9), [#allocation7], 32  }
  0x48   : > { %2901 = vsyncadd (%p2433_p9), [#allocation7], 4294967264 }
  0x49   : > { %2903 = dma.done.wait (%p2433_p9), [#allocation10], 48  }
  0x4a   : > { %2905 = vsyncadd (%p2433_p9), [#allocation10], 4294967248 }
  0x4b   : > { %2907 = dma.done.wait (%p2433_p9), [#allocation13], 32  }
  0x4c   : > { %2909 = vsyncadd (%p2433_p9), [#allocation13], 4294967264 }
  0x4d   : > { %2911 = dma.done.wait (%p2433_p9), [#allocation16], 16  }
  0x4e   : > { %2913 = vsyncadd (%p2433_p9), [#allocation16], 4294967280  ;;  %p795_p13 = scmp.lt.s32.totalorder %s3092_s3, 1  ;;  %s3640_s0 = sld [smem:[#allocation33_spill]]  ;;  %vm812_vm0 = vcmask 261120   ;;  %v2946_v2 = vmov 32.0  }
  0x4f   : > { %2524 = vrcp.f32 %v2946_v2  ;;  %s3641_s26 = sld [smem:[#allocation36_spill]]  ;;  %s3606_s14 = smov 96   ;;  %v2508_v39 = vld [vmem:[#allocation3] ss:$0 sm:$0xff]  ;;  %vm891_vm5 = vcmask 64512   ;;  %vm955_vm6 = vcmask 1043456  }
  0x50   : > { %s796_s22 = scalar_select %p795_p13, %s3092_s3, 1 }
  0x51   : > { %s3643_s29 = sld [smem:[#allocation35_spill]]  ;;  %s3603_s21 = smov 72  }
  0x52   : > { %s3196_s23 = sshll.u32 %s796_s22, 3  ;;  %s3644_s19 = sld [smem:[#allocation37_spill]] }
  0x53   : > { %s2952_s27 = smov 112   ;;  %s3607_s1 = smov 80  }
  0x54   : > { %s798_s7 = scalar_lea.vmem %s3640_s0, %s3196_s23  ;;  %s2947_s0 = smov 104  }
  0x55   : > { %v3202_v0 = vld [vmem:[%s798_s7] sm:$0xff]  ;;  %v2525_v3 = vpop.eup %2524  ;;  %s3642_s30 = smov %s3641_s26  ;;  %v2350_v14 = vld [vmem:[%s3641_s26 + $0x8] sm:$0xff]  ;;  %s2948_s7 = smov 120  }
  0x56   : > { %v813_v1 = vsel %vm812_vm0, %v3202_v0, 0.0  ;;  %v817_v4 = vmul.f32 32.0, %v2525_v3  ;;  %vm821_vm1 = vweird.f32 %v2525_v3  ;;  %876 = vmatpush.bf16.msra.mxu0 %v2350_v14  ;;  %v2349_v15 = vld [vmem:[%s3642_s30] sm:$0xff]  ;;  %s2951_s26 = smov 88   ;;  %s2954_s2 = smov 64  }
  0x57   : > { %814 = vadd.xlane.f32.xlu0 %v813_v1  ;;  %v2505_v25 = vld [vmem:[%s3643_s29] ss:$0 sm:$0xff]  ;;  %v2506_v28 = vld [vmem:[%s3643_s29 + $0x1] ss:$0 sm:$0xff]  ;;  %s2955_s24 = smov 48   ;;  %s2956_s28 = smov 56  }
  0x58   : > { %v818_v5 = vsub.f32 1.0, %v817_v4  ;;  %v2507_v32 = vld [vmem:[%s3644_s19] ss:$0 sm:$0xff]  ;;  %s2957_s11 = smov 40   ;;  %s3307_s22 = sand.u32 1, %s2928_s25  }
  0x59   : > { %s3601_s4 = sshll.u32 %s3307_s22, 3  ;;  %s3645_s6 = sld [smem:[#allocation39_spill]] }
  0x5a   : > { %v819_v6 = vmul.f32 %v2525_v3, %v818_v5  ;;  %877 = vmatpush.bf16.msra.mxu0 %v2349_v15  ;;  %s3315_s19 = scalar_lea.vmem [#allocation17], %s3601_s4  ;;  %s3647_s10 = sld [smem:[#allocation43_spill]] }
  0x5b   : > { %s3648_s8 = sld [smem:[#allocation41_spill]] }
  0x5c   : > { %v820_v7 = vadd.f32 %v2525_v3, %v819_v6 }
  0x5e   : > { %v3206_v8 = vsel %vm821_vm1, %v2525_v3, %v820_v7 }
  0xca   : > { %v815_v9 = vpop.xlane.xlu0 %814 }
  0xcb   : > { %v823_v10 = vmul.f32 %v3206_v8, %v815_v9 }
  0xcd   : > { %v824_v11 = vsub.f32 %v3202_v0, %v823_v10 }
  0xcf   : > { %v825_v12 = vmul.f32 %v824_v11, %v824_v11 }
  0xd1   : > { %v826_v13 = vsel %vm812_vm0, %v825_v12, 0.0 }
  0xd2   : > { %827 = vadd.xlane.f32.xlu0 %v826_v13 }
 0x145   : > { %v828_v16 = vpop.xlane.xlu0 %827 }
 0x146   : > { %v829_v17 = vmul.f32 %v828_v16, %v3206_v8 }
 0x148   : > { %v830_v18 = vadd.f32 1e-05, %v829_v17 }
 0x14a   : > { %2526 = vrsqrt.f32 %v830_v18  ;;  %vm837_vm3 = vweird.f32 %v830_v18 }
 0x150   : > { %v2527_v19 = vpop.eup %2526 }
 0x151   : > { %v832_v20 = vmul.f32 %v2527_v19, %v830_v18  ;;  %vm838_vm2 = vweird.f32 %v2527_v19 }
 0x152   : > { %vm839_vm4 = vmor %vm837_vm3, %vm838_vm2 }
 0x153   : > { %v833_v21 = vmul.f32 %v2527_v19, %v832_v20 }
 0x155   : > { %v834_v22 = vmul.f32 0.5, %v833_v21 }
 0x157   : > { %v835_v23 = vsub.f32 1.5, %v834_v22 }
 0x159   : > { %v836_v24 = vmul.f32 %v2527_v19, %v835_v23 }
 0x15b   : > { %v840_v26 = vsel %vm839_vm4, %v2527_v19, %v836_v24 }
 0x15c   : > { %v841_v27 = vmul.f32 %v840_v26, %v824_v11 }
 0x15e   : > { %v843_v29 = vmul.f32 %v2505_v25, %v841_v27 }
 0x160   : > { %v845_v30 = vadd.f32 %v2506_v28, %v843_v29 }
 0x162   : > { %v846_v31 = vpack.c.bf16 %v845_v30, %v845_v30 }
 0x164   : > { %2264 = vmatmul.msk.bf16.vlgmr.msra.gmra.mxu0 %vm812_vm0, %v846_v31 }
 0x1e1   : > { %v879_v33 = vpop.f32.mrf.mxu0 }
 0x1e2   : > { %v880_v34 = vadd.f32 %v2507_v32, %v879_v33 }
 0x1e4   : > { %v883_v35 = vpack.c.bf16 %v880_v34, %v880_v34  ;;  %v912_v40 = vmul.f32 %v2508_v39, %v880_v34 }
 0x1e6   : > { %v887_v36 = vunpack.c.l.b16 %v883_v35  ;;  %v913_v41 = vsel %vm891_vm5, %v912_v40, 0.0 }
 0x1e8   : > { %v3228_v37 = vpack.c.b16 %v887_v36, %v887_v36 }
 0x1e9   : > { %v881_v38 = vpop.f32.mrf.mxu0 }
 0x1ea   : > { %1170 = vrot.lane.b32.xlu0 %v3228_v37, %s2947_s0  ;;  %977 = vrot.lane.b32.xlu2 %v3228_v37, %s2948_s7 }
 0x1eb   : > { %889 = vrot.lane.b32.xlu1 %v3228_v37, %s3606_s14  ;;  %s3656_s14 = smov 24  }
 0x1f2   : > { %1172 = vrot.lane.b32.xlu2 %v3228_v37, %s3603_s21 }
 0x1f3   : > { %979 = vrot.lane.b32.xlu1 %v3228_v37, %s2951_s26 }
 0x1fa   : > { %1074 = vrot.lane.b32.xlu2 %v3228_v37, %s2952_s27 }
 0x1fb   : > { %1076 = vrot.lane.b32.xlu1 %v3228_v37, %s3607_s1  ;;  %s3657_s1 = smov 16  }
 0x202   : > { %1193 = vrot.lane.b32.xlu2 %v912_v40, %s2947_s0 }
 0x203   : > { %1001 = vrot.lane.b32.xlu1 %v912_v40, %s2948_s7 }
 0x20b   : > { %1097 = vrot.lane.b32.xlu1 %v912_v40, %s2952_s27 }
 0x22b   : > { %914 = vadd.xlane.f32.xlu2 %v913_v41 }
 0x244   : > { %v978_v42 = vpop.permute.xlu2 %977 }
 0x24c   : > { %v1173_v45 = vpop.permute.xlu2 %1172 }
 0x24d   : > { %v1178_v48 = vsel %vm891_vm5, %v1173_v45, 0 }
 0x254   : > { %v1075_v51 = vpop.permute.xlu2 %1074 }
 0x25c   : > { %v1171_v54 = vpop.permute.xlu0 %1170  ;;  %v1194_v59 = vpop.permute.xlu2 %1193 }
 0x25d   : > { %v890_v43 = vpop.permute.xlu1 %889  ;;  %v1196_v61 = vsel %vm891_vm5, %v1194_v59, 0.0 }
 0x25e   : > { %v896_v44 = vsel %vm891_vm5, %v890_v43, 0 }
 0x25f   : > { %905 = vmatpush.bf16.xpose.msra.mxu1 %v896_v44 }
 0x265   : > { %v980_v46 = vpop.permute.xlu1 %979 }
 0x266   : > { %2265 = vmatmul.msk.bf16.vlgmr.msra.gmra.mxu1 %vm891_vm5, %v883_v35  ;;  %v985_v47 = vsel %vm891_vm5, %v980_v46, 0 }
 0x267   : > { %994 = vmatpush.bf16.xpose.msra.mxu3 %v985_v47 }
 0x26d   : > { %v1077_v49 = vpop.permute.xlu1 %1076 }
 0x26e   : > { %2267 = vmatmul.msk.bf16.vlgmr.msra.gmra.mxu3 %vm891_vm5, %v978_v42  ;;  %v1082_v50 = vsel %vm891_vm5, %v1077_v49, 0 }
 0x26f   : > { %1187 = vmatpush.bf16.xpose.msrb.mxu3 %v1178_v48  ;;  %1091 = vmatpush.bf16.xpose.msrb.mxu0 %v1082_v50 }
 0x275   : > { %v1002_v52 = vpop.permute.xlu1 %1001 }
 0x276   : > { %2269 = vmatmul.msk.bf16.vlgmr.msrb.gmra.mxu0 %vm891_vm5, %v1075_v51  ;;  %v1004_v53 = vsel %vm891_vm5, %v1002_v52, 0.0 }
 0x277   : > { %1005 = vadd.xlane.f32.xlu1 %v1004_v53 }
 0x27d   : > { %v1098_v55 = vpop.permute.xlu1 %1097 }
 0x27e   : > { %2271 = vmatmul.msk.bf16.vlgmr.msrb.gmra.mxu3 %vm891_vm5, %v1171_v54  ;;  %v1100_v56 = vsel %vm891_vm5, %v1098_v55, 0.0 }
 0x27f   : > { %1101 = vadd.xlane.f32.xlu1 %v1100_v56 }
 0x29e   : > { %v915_v9 = vpop.xlane.xlu2 %914 }
 0x2e3   : > { %v907_v57 = vpop.f32.mrf.mxu1 }
 0x2e4   : > { %v916_v58 = vsel %vm891_vm5, %v907_v57, -inf }
 0x2e5   : > { %917 = vmax.xlane.f32.xlu0 %v916_v58 }
 0x2ea   : > { %v1006_v15 = vpop.xlane.xlu1 %1005 }
 0x2eb   : > { %v909_v60 = vpop.f32.mrf.mxu1 }
 0x2ed   : > { %1197 = vadd.xlane.f32.xlu0 %v1196_v61 }
 0x2f1   : > { %v996_v62 = vpop.f32.mrf.mxu3 }
 0x2f2   : > { %v1007_v63 = vsel %vm891_vm5, %v996_v62, -inf  ;;  %v1102_v21 = vpop.xlane.xlu1 %1101 }
 0x2f3   : > { %1008 = vmax.xlane.f32.xlu2 %v1007_v63  ;;  %v1093_v1 = vpop.f32.mrf.mxu0 }
 0x2f4   : > { %v1103_v2 = vsel %vm891_vm5, %v1093_v1, -inf }
 0x2f5   : > { %1104 = vmax.xlane.f32.xlu0 %v1103_v2 }
 0x2f9   : > { %v998_v3 = vpop.f32.mrf.mxu3 }
 0x2fb   : > { %v1095_v4 = vpop.f32.mrf.mxu0 }
 0x2fc   : > { %v3289_v4 = vld [vmem:[#allocation3 + $0x1] ss:$0 sm:$0xff] }
 0x301   : > { %v1189_v5 = vpop.f32.mrf.mxu3 }
 0x302   : > { %v1199_v6 = vsel %vm891_vm5, %v1189_v5, -inf }
 0x303   : > { %1200 = vmax.xlane.f32.xlu2 %v1199_v6 }
 0x309   : > { %v1191_v7 = vpop.f32.mrf.mxu3  ;;  %950 = vrot.lane.b32.xlu0 %v3228_v37, %s2954_s2  ;;  %s3602_s2 = smov 16  }
 0x311   : > { %1136 = vrot.lane.b32.xlu0 %v3228_v37, %s2955_s24  ;;  %s3605_s24 = smov 8  }
 0x358   : > { %v918_v10 = vpop.xlane.xlu0 %917 }
 0x359   : > { %v919_v11 = vmax.f32 %v918_v10, %v915_v9 }
 0x35b   : > { %v920_v12 = vsub.f32 %v907_v57, %v919_v11  ;;  %v923_v13 = vsub.f32 %v915_v9, %v919_v11 }
 0x35d   : > { %v921_v14 = vmul.f32 1.442695, %v920_v12  ;;  %v924_v44 = vmul.f32 1.442695, %v923_v13 }
 0x35f   : > { %2528 = vpow2.f32 %v921_v14 }
 0x360   : > { %v3265_v16 = vpop.xlane.xlu0 %1197 }
 0x365   : > { %v3267_v17 = vpop.eup %2528 }
 0x366   : > { %v1009_v18 = vpop.xlane.xlu2 %1008  ;;  %v926_v19 = vsel %vm891_vm5, %v3267_v17, 0.0 }
 0x367   : > { %v1010_v20 = vmax.f32 %v1009_v18, %v1006_v15  ;;  %927 = vadd.xlane.f32.xlu2 %v926_v19 }
 0x368   : > { %v1105_v22 = vpop.xlane.xlu0 %1104 }
 0x369   : > { %v1011_v23 = vsub.f32 %v996_v62, %v1010_v20  ;;  %v1106_v24 = vmax.f32 %v1105_v22, %v1102_v21  ;;  %v1014_v46 = vsub.f32 %v1006_v15, %v1010_v20 }
 0x36b   : > { %v1012_v25 = vmul.f32 1.442695, %v1011_v23  ;;  %v1107_v26 = vsub.f32 %v1093_v1, %v1106_v24  ;;  %v1110_v49 = vsub.f32 %v1102_v21, %v1106_v24  ;;  %v1015_v50 = vmul.f32 1.442695, %v1014_v46 }
 0x36d   : > { %2530 = vpow2.f32 %v1012_v25  ;;  %v1108_v27 = vmul.f32 1.442695, %v1107_v26  ;;  %v1111_v51 = vmul.f32 1.442695, %v1110_v49 }
 0x36f   : > { %2532 = vpow2.f32 %v1108_v27 }
 0x373   : > { %v3271_v28 = vpop.eup %2530 }
 0x374   : > { %v1017_v29 = vsel %vm891_vm5, %v3271_v28, 0.0 }
 0x375   : > { %v3275_v30 = vpop.eup %2532  ;;  %1018 = vadd.xlane.f32.xlu1 %v1017_v29 }
 0x376   : > { %v1201_v31 = vpop.xlane.xlu2 %1200  ;;  %v1113_v32 = vsel %vm891_vm5, %v3275_v30, 0.0 }
 0x377   : > { %v1202_v33 = vmax.f32 %v1201_v31, %v3265_v16  ;;  %1114 = vadd.xlane.f32.xlu2 %v1113_v32 }
 0x379   : > { %v1203_v34 = vsub.f32 %v1189_v5, %v1202_v33  ;;  %v1206_v35 = vsub.f32 %v3265_v16, %v1202_v33 }
 0x37b   : > { %v1204_v36 = vmul.f32 1.442695, %v1203_v34  ;;  %v951_v38 = vpop.permute.xlu0 %950  ;;  %v1207_v5 = vmul.f32 1.442695, %v1206_v35 }
 0x37c   : > { %v957_v39 = vsel %vm955_vm6, %v951_v38, 0 }
 0x37d   : > { %2534 = vpow2.f32 %v1204_v36  ;;  %966 = vmatpush.bf16.msra.mxu2 %v957_v39 }
 0x37e   : > { %2536 = vpow2.f32 %v924_v44 }
 0x383   : > { %v3282_v40 = vpop.eup %2534  ;;  %v1137_v41 = vpop.permute.xlu0 %1136 }
 0x384   : > { %v1146_v42 = vsel %vm955_vm6, %v1137_v41, 0  ;;  %v1209_v43 = vsel %vm891_vm5, %v3282_v40, 0.0  ;;  %v2537_v45 = vpop.eup %2536 }
 0x385   : > { %1155 = vmatpush.bf16.msrb.mxu1 %v1146_v42  ;;  %1210 = vadd.xlane.f32.xlu2 %v1209_v43 }
 0x38e   : > { %1040 = vrot.lane.b32.xlu1 %v3228_v37, %s2956_s28  ;;  %s3604_s28 = smov 24  }
 0x39d   : > { %1232 = vrot.lane.b32.xlu2 %v3228_v37, %s2957_s11 }
 0x3da   : > { %v928_v47 = vpop.xlane.xlu2 %927 }
 0x3db   : > { %v929_v48 = vadd.f32 %v2537_v45, %v928_v47 }
 0x3dd   : > { %2538 = vrcp.f32 %v929_v48  ;;  %v941_v55 = vand.u32 2147483648, %v929_v48  ;;  %v939_v37 = vand.u32 2147483647, %v929_v48  ;;  %vm935_vm8 = vweird.f32 %v929_v48 }
 0x3de   : > { %2540 = vpow2.f32 %v1015_v50 }
 0x3df   : > { %2542 = vpow2.f32 %v1111_v51  ;;  %v942_v1 = vor.u32 1.1754944e-38, %v941_v55  ;;  %vm940_vm10 = vcmp.eq.f32.partialorder %v939_v37, 8.507059e+37 }
 0x3e3   : > { %v2539_v52 = vpop.eup %2538 }
 0x3e4   : > { %v931_v53 = vmul.f32 %v2539_v52, %v929_v48  ;;  %v2541_v56 = vpop.eup %2540  ;;  %vm936_vm7 = vweird.f32 %v2539_v52 }
 0x3e5   : > { %v2543_v60 = vpop.eup %2542  ;;  %vm937_vm9 = vmor %vm935_vm8, %vm936_vm7 }
 0x3e6   : > { %v932_v54 = vsub.f32 1.0, %v931_v53 }
 0x3e8   : > { %v933_v57 = vmul.f32 %v2539_v52, %v932_v54  ;;  %v1019_v58 = vpop.xlane.xlu1 %1018 }
 0x3e9   : > { %v1020_v59 = vadd.f32 %v2541_v56, %v1019_v58 }
 0x3ea   : > { %v1115_v61 = vpop.xlane.xlu2 %1114  ;;  %v934_v62 = vadd.f32 %v2539_v52, %v933_v57 }
 0x3eb   : > { %2544 = vrcp.f32 %v1020_v59  ;;  %v1116_v63 = vadd.f32 %v2543_v60, %v1115_v61  ;;  %v1032_v16 = vand.u32 2147483648, %v1020_v59  ;;  %v1030_v20 = vand.u32 2147483647, %v1020_v59 }
 0x3ec   : > { %v938_v2 = vsel %vm937_vm9, %v2539_v52, %v934_v62  ;;  %vm1026_vm12 = vweird.f32 %v1020_v59 }
 0x3ed   : > { %2546 = vrcp.f32 %v1116_v63  ;;  %v943_v3 = vsel %vm940_vm10, %v942_v1, %v938_v2  ;;  %v1126_v25 = vand.u32 2147483647, %v1116_v63  ;;  %v1033_v27 = vor.u32 1.1754944e-38, %v1032_v16 }
 0x3ee   : > { %v945_v6 = vmul.f32 %v3267_v17, %v943_v3  ;;  %v946_v7 = vmul.f32 %v2537_v45, %v943_v3  ;;  %2548 = vpow2.f32 %v1207_v5  ;;  %v1128_v17 = vand.u32 2147483648, %v1116_v63 }
 0x3ef   : > { %vm1031_vm15 = vcmp.eq.f32.partialorder %v1030_v20, 8.507059e+37  ;;  %vm1122_vm1 = vweird.f32 %v1116_v63  ;;  %vm1127_vm3 = vcmp.eq.f32.partialorder %v1126_v25, 8.507059e+37  ;;  %vm1306_vm10 = vcmask 72768   ;;  %v2352_v25 = vld [vmem:[%s3645_s6 + $0x8] sm:$0xff] }
 0x3f0   : > { %v947_v9 = vpack.c.bf16 %v945_v6, %v945_v6  ;;  %v3293_v11 = vmul.f32 %v3289_v4, %v946_v7  ;;  %v1129_v33 = vor.u32 1.1754944e-38, %v1128_v17  ;;  %1296 = vmatpush.bf16.msra.mxu0 %v2352_v25 }
 0x3f1   : > { %v2545_v10 = vpop.eup %2544 }
 0x3f2   : > { %v1022_v12 = vmul.f32 %v2545_v10, %v1020_v59  ;;  %2266 = vmatmul.msk.bf16.vlgmr.msra.gmra.mxu2 %vm891_vm5, %v947_v9  ;;  %vm1027_vm11 = vweird.f32 %v2545_v10 }
 0x3f3   : > { %v2547_v13 = vpop.eup %2546  ;;  %vm1028_vm14 = vmor %vm1026_vm12, %vm1027_vm11  ;;  %vm973_vm11 = vcmask 60416   ;;  %vm1070_vm12 = vcmask 126016  }
 0x3f4   : > { %v1023_v14 = vsub.f32 1.0, %v1022_v12  ;;  %v1118_v15 = vmul.f32 %v2547_v13, %v1116_v63  ;;  %v2549_v21 = vpop.eup %2548  ;;  %vm1123_vm13 = vweird.f32 %v2547_v13 }
 0x3f5   : > { %vm1124_vm2 = vmor %vm1122_vm1, %vm1123_vm13  ;;  %vm1166_vm13 = vcmask 191616  }
 0x3f6   : > { %v1024_v18 = vmul.f32 %v2545_v10, %v1023_v14  ;;  %v1119_v19 = vsub.f32 1.0, %v1118_v15 }
 0x3f8   : > { %v1120_v22 = vmul.f32 %v2547_v13, %v1119_v19  ;;  %v1211_v23 = vpop.xlane.xlu2 %1210  ;;  %v1025_v24 = vadd.f32 %v2545_v10, %v1024_v18 }
 0x3f9   : > { %v1212_v26 = vadd.f32 %v2549_v21, %v1211_v23 }
 0x3fa   : > { %v1029_v29 = vsel %vm1028_vm14, %v2545_v10, %v1025_v24  ;;  %v1121_v31 = vadd.f32 %v2547_v13, %v1120_v22  ;;  %vm1262_vm14 = vcmask 257216  }
 0x3fb   : > { %2550 = vrcp.f32 %v1212_v26  ;;  %v1034_v32 = vsel %vm1031_vm15, %v1033_v27, %v1029_v29  ;;  %v1224_v55 = vand.u32 2147483648, %v1212_v26  ;;  %v1222_v57 = vand.u32 2147483647, %v1212_v26 }
 0x3fc   : > { %v1037_v34 = vmul.f32 %v2541_v56, %v1034_v32  ;;  %v1036_v35 = vmul.f32 %v3271_v28, %v1034_v32  ;;  %v1125_v36 = vsel %vm1124_vm2, %v2547_v13, %v1121_v31  ;;  %vm1218_vm7 = vweird.f32 %v1212_v26 }
 0x3fd   : > { %v1130_v38 = vsel %vm1127_vm3, %v1129_v33, %v1125_v36  ;;  %v1225_v37 = vor.u32 1.1754944e-38, %v1224_v55  ;;  %vm1223_vm9 = vcmp.eq.f32.partialorder %v1222_v57, 8.507059e+37  ;;  %v2510_v33 = vld [vmem:[#allocation6] ss:$0 sm:$0xff] }
 0x3fe   : > { %v1039_v39 = vmul.f32 %v3289_v4, %v1037_v34  ;;  %v1072_v41 = vadd.f32 %v1036_v35, %v945_v6  ;;  %v1133_v42 = vmul.f32 %v2543_v60, %v1130_v38  ;;  %v1132_v43 = vmul.f32 %v3275_v30, %v1130_v38 }
 0x3ff   : > { %v1073_v44 = vadd.f32 %v1037_v34, %v946_v7  ;;  %v1038_v30 = vpack.c.bf16 %v1036_v35, %v1036_v35 }
 0x400   : > { %v1233_v45 = vpop.permute.xlu2 %1232  ;;  %1043 = vrot.lane.b32.xlu0 %v1039_v39, %s2948_s7  ;;  %v1041_v46 = vpop.permute.xlu1 %1040  ;;  %v1135_v47 = vmul.f32 %v3289_v4, %v1133_v42  ;;  %v1168_v48 = vadd.f32 %v1132_v43, %v1072_v41  ;;  %v1134_v49 = vpack.c.bf16 %v1132_v43, %v1132_v43  ;;  %v2356_v41 = vld [vmem:[%s3647_s10 + $0x8] sm:$0xff] }
 0x401   : > { %v2551_v50 = vpop.eup %2550  ;;  %v1242_v28 = vsel %vm955_vm6, %v1233_v45, 0  ;;  %v1050_v51 = vsel %vm955_vm6, %v1041_v46, 0  ;;  %v1169_v52 = vadd.f32 %v1133_v42, %v1073_v44  ;;  %1404 = vmatpush.bf16.msra.mxu3 %v2356_v41 }
 0x402   : > { %v1214_v53 = vmul.f32 %v2551_v50, %v1212_v26  ;;  %1139 = vrot.lane.b32.xlu1 %v1135_v47, %s2952_s27  ;;  %1059 = vmatpush.bf16.msrb.mxu2 %v1050_v51  ;;  %vm1219_vm4 = vweird.f32 %v2551_v50  ;;  %v2351_v26 = vld [vmem:[%s3645_s6] sm:$0xff]  ;;  %s1987_s6 = scalar_lea.sflag [#allocation5], %s3307_s22 }
 0x403   : > { %2270 = vmatmul.msk.bf16.vlgmr.msrb.gmra.mxu1 %vm891_vm5, %v1134_v49  ;;  %vm1220_vm8 = vmor %vm1218_vm7, %vm1219_vm4  ;;  %1297 = vmatpush.bf16.msra.mxu0 %v2351_v26  ;;  %v2354_v49 = vld [vmem:[%s3648_s8 + $0x8] sm:$0xff] }
 0x404   : > { %v1215_v54 = vsub.f32 1.0, %v1214_v53  ;;  %1367 = vmatpush.bf16.msra.mxu1 %v2354_v49 }
 0x405   : > { %2268 = vmatmul.msk.bf16.vlgmr.msrb.gmra.mxu2 %vm891_vm5, %v1038_v30 }
 0x406   : > { %1251 = vmatpush.bf16.msra.mxu2 %v1242_v28  ;;  %v1216_v56 = vmul.f32 %v2551_v50, %v1215_v54  ;;  %v2513_v28 = vld [vmem:[#allocation9] ss:$0 sm:$0xff] }
 0x408   : > { %v1217_v58 = vadd.f32 %v2551_v50, %v1216_v56 }
 0x40a   : > { %v1221_v59 = vsel %vm1220_vm8, %v2551_v50, %v1217_v58  ;;  %v2353_v50 = vld [vmem:[%s3648_s8] sm:$0xff] }
 0x40b   : > { %v1226_v60 = vsel %vm1223_vm9, %v1225_v37, %v1221_v59  ;;  %1368 = vmatpush.bf16.msra.mxu1 %v2353_v50 }
 0x40c   : > { %v1228_v61 = vmul.f32 %v3282_v40, %v1226_v60  ;;  %v1229_v62 = vmul.f32 %v2549_v21, %v1226_v60 }
 0x40e   : > { %v1231_v63 = vmul.f32 %v3289_v4, %v1229_v62  ;;  %v1264_v1 = vadd.f32 %v1228_v61, %v1168_v48  ;;  %v1265_v2 = vadd.f32 %v1229_v62, %v1169_v52  ;;  %v1230_v6 = vpack.c.bf16 %v1228_v61, %v1228_v61 }
 0x410   : > { %1235 = vrot.lane.b32.xlu0 %v1231_v63, %s2947_s0  ;;  %v1303_v3 = vmul.f32 0.25, %v1264_v1  ;;  %v1305_v5 = vmul.f32 0.25, %v1265_v2  ;;  %v2511_v2 = vld [vmem:[%s3643_s29 + $0x2] ss:$0 sm:$0xff] }
 0x412   : > { %1304 = vst.msk [vmem:[%s3315_s19] sm:$0xff] %vm891_vm5, %v1303_v3 }
 0x413   : > { %1307 = vst.msk [vmem:[%s3315_s19] sm:$0xff] %vm1306_vm10, %v1305_v5 }
 0x415   : > { %2272 = vmatmul.msk.bf16.vlgmr.msra.gmra.mxu2 %vm891_vm5, %v1230_v6  ;;  %v2512_v6 = vld [vmem:[%s3643_s29 + $0x3] ss:$0 sm:$0xff] }
 0x472   : > { %v1044_v15 = vpop.permute.xlu0 %1043 }
 0x474   : > { %v1140_v10 = vpop.permute.xlu1 %1139 }
 0x475   : > { %v968_v40 = vpop.f32.mrf.mxu2 }
 0x476   : > { %v969_v4 = vadd.f32 %v968_v40, %v3293_v11 }
 0x478   : > { %v972_v7 = vpack.c.bf16 %v969_v4, %v969_v4 }
 0x47a   : > { %974 = vst.msk [vmem:[#allocation2] sm:$0xf] %vm973_vm11, %v972_v7 }
 0x47d   : > { %v970_v9 = vpop.f32.mrf.mxu2 }
 0x47e   : > { %v2514_v9 = vld [vmem:[#allocation8] ss:$0 sm:$0xff] }
 0x480   : > { %v1157_v12 = vpop.f32.mrf.mxu1 }
 0x481   : > { %v1158_v13 = vadd.f32 %v1157_v12, %v1140_v10  ;;  %v2515_v10 = vld [vmem:[#allocation11] ss:$0 sm:$0xff] }
 0x482   : > { %v1236_v17 = vpop.permute.xlu0 %1235 }
 0x483   : > { %v1161_v14 = vpack.c.bf16 %v1158_v13, %v1158_v13 }
 0x485   : > { %1163 = vrot.lane.b32.xlu2 %v1161_v14, %s3602_s2  ;;  %s3646_s2 = sld [smem:[#allocation34_spill]] }
 0x488   : > { %v1159_v16 = vpop.f32.mrf.mxu1  ;;  %v1061_v18 = vpop.f32.mrf.mxu2 }
 0x489   : > { %v1062_v19 = vadd.f32 %v1061_v18, %v1044_v15 }
 0x48b   : > { %v1065_v20 = vpack.c.bf16 %v1062_v19, %v1062_v19  ;;  %s802_s11 = scalar_lea.vmem %s3646_s2, %s3196_s23 }
 0x48c   : > { %v809_v42 = vld [vmem:[%s802_s11] sm:$0xff] }
 0x48d   : > { %1067 = vrot.lane.b32.xlu1 %v1065_v20, %s3605_s24  ;;  %v1374_v43 = vpack.c.bf16 %v809_v42, %v809_v42  ;;  %s3650_s24 = smov 96  }
 0x490   : > { %v1063_v11 = vpop.f32.mrf.mxu2 }
 0x498   : > { %v1253_v21 = vpop.f32.mrf.mxu2 }
 0x499   : > { %v1254_v22 = vadd.f32 %v1253_v21, %v1236_v17 }
 0x49b   : > { %v1257_v23 = vpack.c.bf16 %v1254_v22, %v1254_v22 }
 0x49d   : > { %1259 = vrot.lane.b32.xlu0 %v1257_v23, %s3604_s28  ;;  %s3651_s28 = smov 72  }
 0x4a0   : > { %v1255_v24 = vpop.f32.mrf.mxu2 }
 0x4df   : > { %v1164_v29 = vpop.permute.xlu2 %1163 }
 0x4ff   : > { %v1068_v27 = vpop.permute.xlu1 %1067 }
 0x500   : > { %1071 = vst.msk [vmem:[#allocation2] sm:$0xf] %vm1070_vm12, %v1068_v27 }
 0x501   : > { %1167 = vst.msk [vmem:[#allocation2] sm:$0xf] %vm1166_vm13, %v1164_v29 }
 0x50f   : > { %v1260_v31 = vpop.permute.xlu0 %1259 }
 0x510   : > { %1263 = vst.msk [vmem:[#allocation2] sm:$0xf] %vm1262_vm14, %v1260_v31 }
 0x517   : > { %v1266_v32 = vld [vmem:[#allocation2] sm:$0xf] }
 0x518   : > { %2281 = vmatmul.msk.bf16.vlgmr.msra.gmra.mxu0 %vm812_vm0, %v1266_v32 }
 0x595   : > { %v1299_v34 = vpop.f32.mrf.mxu0 }
 0x596   : > { %v1300_v35 = vadd.f32 %v2510_v33, %v1299_v34 }
 0x598   : > { %v3338_v36 = vadd.f32 %v1300_v35, %v3202_v0  ;;  %v2355_v0 = vld [vmem:[%s3647_s10] sm:$0xff] }
 0x599   : > { %1405 = vmatpush.bf16.msra.mxu3 %v2355_v0 }
 0x59a   : > { %v1311_v38 = vsel %vm812_vm0, %v3338_v36, 0.0 }
 0x59b   : > { %1312 = vadd.xlane.f32.xlu1 %v1311_v38 }
 0x59c   : > { %2299 = vmatmul.msk.bf16.vlgmr.msra.gmra.mxu3 %vm812_vm0, %v1374_v43 }
 0x59d   : > { %v1301_v39 = vpop.f32.mrf.mxu0 }
 0x60e   : > { %v1313_v44 = vpop.xlane.xlu1 %1312 }
 0x60f   : > { %v1314_v45 = vmul.f32 %v1313_v44, %v3206_v8 }
 0x611   : > { %v1315_v46 = vsub.f32 %v3338_v36, %v1314_v45 }
 0x613   : > { %v1316_v47 = vmul.f32 %v1315_v46, %v1315_v46 }
 0x615   : > { %v1317_v48 = vsel %vm812_vm0, %v1316_v47, 0.0 }
 0x616   : > { %1318 = vadd.xlane.f32.xlu2 %v1317_v48 }
 0x61f   : > { %v1407_v51 = vpop.f32.mrf.mxu3 }
 0x620   : > { %v1408_v30 = vadd.f32 %v2513_v28, %v1407_v51 }
 0x622   : > { %v1412_v55 = vpack.c.bf16 %v1408_v30, %v1408_v30 }
 0x624   : > { %v1419_v56 = vsel %vm891_vm5, %v1412_v55, 0  ;;  %v1474_v57 = vunpack.c.l.b16 %v1412_v55 }
 0x625   : > { %1428 = vmatpush.bf16.xpose.msrb.mxu2 %v1419_v56 }
 0x626   : > { %v3364_v58 = vpack.c.b16 %v1474_v57, %v1474_v57 }
 0x627   : > { %v1409_v37 = vpop.f32.mrf.mxu3 }
 0x628   : > { %1506 = vrot.lane.b32.xlu0 %v3364_v58, %s2948_s7 }
 0x630   : > { %1602 = vrot.lane.b32.xlu0 %v3364_v58, %s2952_s27 }
 0x689   : > { %v1319_v52 = vpop.xlane.xlu2 %1318 }
 0x68a   : > { %v1320_v53 = vmul.f32 %v1319_v52, %v3206_v8 }
 0x68c   : > { %v1321_v54 = vadd.f32 1e-05, %v1320_v53 }
 0x68e   : > { %2552 = vrsqrt.f32 %v1321_v54  ;;  %vm1328_vm1 = vweird.f32 %v1321_v54 }
 0x694   : > { %v2553_v59 = vpop.eup %2552 }
 0x695   : > { %v1323_v60 = vmul.f32 %v2553_v59, %v1321_v54  ;;  %vm1329_vm15 = vweird.f32 %v2553_v59 }
 0x696   : > { %vm1330_vm2 = vmor %vm1328_vm1, %vm1329_vm15 }
 0x697   : > { %v1324_v61 = vmul.f32 %v2553_v59, %v1323_v60 }
 0x699   : > { %v1325_v62 = vmul.f32 0.5, %v1324_v61 }
 0x69a   : > { %v1507_v11 = vpop.permute.xlu0 %1506 }
 0x69b   : > { %v1326_v63 = vsub.f32 1.5, %v1325_v62  ;;  %v1512_v17 = vsel %vm891_vm5, %v1507_v11, 0 }
 0x69c   : > { %1521 = vmatpush.bf16.xpose.msrb.mxu1 %v1512_v17 }
 0x69d   : > { %v1327_v1 = vmul.f32 %v2553_v59, %v1326_v63 }
 0x69f   : > { %v1331_v3 = vsel %vm1330_vm2, %v2553_v59, %v1327_v1 }
 0x6a0   : > { %v1332_v5 = vmul.f32 %v1331_v3, %v1315_v46 }
 0x6a2   : > { %v1334_v40 = vmul.f32 %v2511_v2, %v1332_v5  ;;  %v1603_v21 = vpop.permute.xlu0 %1602 }
 0x6a3   : > { %v1608_v22 = vsel %vm891_vm5, %v1603_v21, 0 }
 0x6a4   : > { %v1336_v4 = vadd.f32 %v2512_v6, %v1334_v40  ;;  %1617 = vmatpush.bf16.xpose.msra.mxu2 %v1608_v22 }
 0x6a6   : > { %v1337_v7 = vpack.c.bf16 %v1336_v4, %v1336_v4 }
 0x6a8   : > { %2290 = vmatmul.msk.bf16.vlgmr.msra.gmra.mxu1 %vm812_vm0, %v1337_v7 }
 0x725   : > { %v1370_v12 = vpop.f32.mrf.mxu1 }
 0x726   : > { %v1371_v13 = vadd.f32 %v2514_v9, %v1370_v12 }
 0x728   : > { %v1411_v14 = vpack.c.bf16 %v1371_v13, %v1371_v13  ;;  %v1435_v15 = vmul.f32 %v2515_v10, %v1371_v13 }
 0x72a   : > { %1718 = vrot.lane.b32.xlu2 %v1435_v15, %s2947_s0  ;;  %2300 = vmatmul.msk.bf16.vlgmr.msrb.gmra.mxu2 %vm891_vm5, %v1411_v14  ;;  %v1502_v16 = vunpack.c.l.b16 %v1411_v14  ;;  %v1436_v20 = vsel %vm891_vm5, %v1435_v15, 0.0 }
 0x72c   : > { %v1503_v18 = vpack.c.b16 %v1502_v16, %v1502_v16 }
 0x72d   : > { %v1372_v19 = vpop.f32.mrf.mxu1 }
 0x72e   : > { %1695 = vrot.lane.b32.xlu1 %v1503_v18, %s2947_s0  ;;  %1504 = vrot.lane.b32.xlu0 %v1503_v18, %s2948_s7 }
 0x736   : > { %1697 = vrot.lane.b32.xlu0 %v3364_v58, %s2947_s0 }
 0x73e   : > { %1600 = vrot.lane.b32.xlu0 %v1503_v18, %s2952_s27 }
 0x746   : > { %1528 = vrot.lane.b32.xlu0 %v1435_v15, %s2948_s7 }
 0x74e   : > { %1623 = vrot.lane.b32.xlu0 %v1435_v15, %s2952_s27 }
 0x753   : > { %1437 = vadd.xlane.f32.xlu2 %v1436_v20 }
 0x784   : > { %v1719_v42 = vpop.permute.xlu2 %1718 }
 0x785   : > { %v1721_v43 = vsel %vm891_vm5, %v1719_v42, 0.0 }
 0x7a0   : > { %v1505_v23 = vpop.permute.xlu0 %1504  ;;  %v1696_v27 = vpop.permute.xlu1 %1695 }
 0x7a1   : > { %2302 = vmatmul.msk.bf16.vlgmr.msrb.gmra.mxu1 %vm891_vm5, %v1505_v23 }
 0x7a8   : > { %v1698_v24 = vpop.permute.xlu0 %1697 }
 0x7a9   : > { %v1703_v25 = vsel %vm891_vm5, %v1698_v24, 0 }
 0x7aa   : > { %1712 = vmatpush.bf16.xpose.msra.mxu1 %v1703_v25 }
 0x7ad   : > { %v1430_v26 = vpop.f32.mrf.mxu2 }
 0x7ae   : > { %v1439_v34 = vsel %vm891_vm5, %v1430_v26, -inf }
 0x7b0   : > { %v1601_v29 = vpop.permute.xlu0 %1600 }
 0x7b1   : > { %2304 = vmatmul.msk.bf16.vlgmr.msra.gmra.mxu2 %vm891_vm5, %v1601_v29  ;;  %2306 = vmatmul.msk.bf16.vlgmr.msra.gmra.mxu1 %vm891_vm5, %v1696_v27 }
 0x7b5   : > { %v1432_v31 = vpop.f32.mrf.mxu2 }
 0x7b8   : > { %v1529_v32 = vpop.permute.xlu0 %1528 }
 0x7b9   : > { %v1531_v33 = vsel %vm891_vm5, %v1529_v32, 0.0 }
 0x7ba   : > { %1532 = vadd.xlane.f32.xlu0 %v1531_v33 }
 0x7c0   : > { %v1624_v35 = vpop.permute.xlu0 %1623 }
 0x7c1   : > { %v1626_v38 = vsel %vm891_vm5, %v1624_v35, 0.0 }
 0x7c2   : > { %1440 = vmax.xlane.f32.xlu0 %v1439_v34 }
 0x7c6   : > { %v1438_v48 = vpop.xlane.xlu2 %1437 }
 0x7ca   : > { %1627 = vadd.xlane.f32.xlu0 %v1626_v38 }
 0x81e   : > { %v1523_v39 = vpop.f32.mrf.mxu1 }
 0x81f   : > { %v1534_v41 = vsel %vm891_vm5, %v1523_v39, -inf }
 0x820   : > { %1535 = vmax.xlane.f32.xlu1 %v1534_v41 }
 0x826   : > { %v1525_v0 = vpop.f32.mrf.mxu1 }
 0x828   : > { %1722 = vadd.xlane.f32.xlu1 %v1721_v43 }
 0x82d   : > { %v1533_v44 = vpop.xlane.xlu0 %1532 }
 0x82e   : > { %v1714_v45 = vpop.f32.mrf.mxu1 }
 0x82f   : > { %v1724_v46 = vsel %vm891_vm5, %v1714_v45, -inf }
 0x830   : > { %1725 = vmax.xlane.f32.xlu2 %v1724_v46 }
 0x834   : > { %v1619_v47 = vpop.f32.mrf.mxu2 }
 0x835   : > { %v1441_v49 = vpop.xlane.xlu0 %1440  ;;  %v1629_v50 = vsel %vm891_vm5, %v1619_v47, -inf }
 0x836   : > { %v1442_v28 = vmax.f32 %v1441_v49, %v1438_v48  ;;  %v1716_v51 = vpop.f32.mrf.mxu1  ;;  %1630 = vmax.xlane.f32.xlu1 %v1629_v50 }
 0x838   : > { %v1443_v52 = vsub.f32 %v1430_v26, %v1442_v28  ;;  %v1446_v19 = vsub.f32 %v1438_v48, %v1442_v28 }
 0x83a   : > { %v1444_v53 = vmul.f32 1.442695, %v1443_v52  ;;  %v1447_v20 = vmul.f32 1.442695, %v1446_v19 }
 0x83c   : > { %2554 = vpow2.f32 %v1444_v53  ;;  %v1621_v30 = vpop.f32.mrf.mxu2 }
 0x83d   : > { %v1628_v6 = vpop.xlane.xlu0 %1627 }
 0x842   : > { %v3400_v54 = vpop.eup %2554 }
 0x843   : > { %v1449_v55 = vsel %vm891_vm5, %v3400_v54, 0.0 }
 0x844   : > { %1450 = vadd.xlane.f32.xlu0 %v1449_v55 }
 0x848   : > { %1567 = vrot.lane.b32.xlu2 %v3364_v58, %s2951_s26  ;;  %s3649_s26 = smov 80  }
 0x893   : > { %v1536_v56 = vpop.xlane.xlu1 %1535 }
 0x894   : > { %v1537_v57 = vmax.f32 %v1536_v56, %v1533_v44  ;;  %v3435_v56 = vld [vmem:[#allocation11 + $0x1] ss:$0 sm:$0xff] }
 0x896   : > { %v1538_v37 = vsub.f32 %v1523_v39, %v1537_v57  ;;  %v1541_v22 = vsub.f32 %v1533_v44, %v1537_v57 }
 0x898   : > { %v1539_v59 = vmul.f32 1.442695, %v1538_v37  ;;  %v1542_v23 = vmul.f32 1.442695, %v1541_v22 }
 0x89a   : > { %2556 = vpow2.f32 %v1539_v59 }
 0x89b   : > { %v1723_v61 = vpop.xlane.xlu1 %1722 }
 0x8a0   : > { %v3406_v60 = vpop.eup %2556 }
 0x8a1   : > { %v1544_v62 = vsel %vm891_vm5, %v3406_v60, 0.0 }
 0x8a2   : > { %1545 = vadd.xlane.f32.xlu2 %v1544_v62 }
 0x8a3   : > { %v1726_v63 = vpop.xlane.xlu2 %1725 }
 0x8a4   : > { %v1727_v1 = vmax.f32 %v1726_v63, %v1723_v61 }
 0x8a6   : > { %v1728_v2 = vsub.f32 %v1714_v45, %v1727_v1  ;;  %v1731_v3 = vsub.f32 %v1723_v61, %v1727_v1 }
 0x8a8   : > { %v1729_v5 = vmul.f32 1.442695, %v1728_v2 }
 0x8a9   : > { %v1631_v40 = vpop.xlane.xlu1 %1630 }
 0x8aa   : > { %2558 = vpow2.f32 %v1729_v5  ;;  %v1632_v4 = vmax.f32 %v1631_v40, %v1628_v6 }
 0x8ab   : > { %v1568_v7 = vpop.permute.xlu2 %1567 }
 0x8ac   : > { %v1633_v9 = vsub.f32 %v1619_v47, %v1632_v4  ;;  %v1636_v10 = vsub.f32 %v1628_v6, %v1632_v4  ;;  %v1577_v12 = vsel %vm955_vm6, %v1568_v7, 0 }
 0x8ad   : > { %1586 = vmatpush.bf16.msrb.mxu3 %v1577_v12 }
 0x8ae   : > { %v1634_v13 = vmul.f32 1.442695, %v1633_v9  ;;  %v1637_v39 = vmul.f32 1.442695, %v1636_v10 }
 0x8b0   : > { %v3411_v14 = vpop.eup %2558  ;;  %2560 = vpow2.f32 %v1634_v13 }
 0x8b1   : > { %v1734_v15 = vsel %vm891_vm5, %v3411_v14, 0.0  ;;  %2562 = vpow2.f32 %v1447_v20 }
 0x8b2   : > { %1735 = vadd.xlane.f32.xlu1 %v1734_v15 }
 0x8b6   : > { %v3415_v16 = vpop.eup %2560 }
 0x8b7   : > { %v1639_v18 = vsel %vm891_vm5, %v3415_v16, 0.0  ;;  %v1451_v11 = vpop.xlane.xlu0 %1450  ;;  %v3425_v17 = vpop.eup %2562 }
 0x8b8   : > { %1640 = vadd.xlane.f32.xlu0 %v1639_v18  ;;  %v1452_v21 = vadd.f32 %v3425_v17, %v1451_v11 }
 0x8ba   : > { %1662 = vrot.lane.b32.xlu2 %v3364_v58, %s3649_s26  ;;  %2564 = vrcp.f32 %v1452_v21  ;;  %v1464_v38 = vand.u32 2147483648, %v1452_v21  ;;  %vm1458_vm4 = vweird.f32 %v1452_v21  ;;  %v1462_v41 = vand.u32 2147483647, %v1452_v21  ;;  %s3658_s26 = sld [smem:[#allocation48_spill]] }
 0x8bb   : > { %2566 = vpow2.f32 %v1542_v23 }
 0x8bc   : > { %v1465_v47 = vor.u32 1.1754944e-38, %v1464_v38  ;;  %vm1463_vm9 = vcmp.eq.f32.partialorder %v1462_v41, 8.507059e+37 }
 0x8c0   : > { %v2565_v24 = vpop.eup %2564 }
 0x8c1   : > { %v1454_v25 = vmul.f32 %v2565_v24, %v1452_v21  ;;  %v2567_v26 = vpop.eup %2566  ;;  %vm1459_vm3 = vweird.f32 %v2565_v24 }
 0x8c2   : > { %vm3428_vm7 = vmor %vm1458_vm4, %vm1459_vm3 }
 0x8c3   : > { %v1455_v31 = vsub.f32 1.0, %v1454_v25 }
 0x8c5   : > { %v1456_v32 = vmul.f32 %v2565_v24, %v1455_v31 }
 0x8c7   : > { %v1457_v34 = vadd.f32 %v2565_v24, %v1456_v32 }
 0x8c9   : > { %v1461_v44 = vsel %vm3428_vm7, %v2565_v24, %v1457_v34 }
 0x8ca   : > { %v1466_v52 = vsel %vm1463_vm9, %v1465_v47, %v1461_v44 }
 0x8cb   : > { %1476 = vrot.lane.b32.xlu1 %v3364_v58, %s3650_s24  ;;  %v1468_v37 = vmul.f32 %v3400_v54, %v1466_v52  ;;  %s3659_s24 = smov %s3658_s26 }
 0x8cc   : > { %1757 = vrot.lane.b32.xlu0 %v3364_v58, %s3651_s28  ;;  %v1732_v58 = vmul.f32 1.442695, %v1731_v3 }
 0x915   : > { %v1546_v27 = vpop.xlane.xlu2 %1545 }
 0x916   : > { %v1547_v29 = vadd.f32 %v2567_v26, %v1546_v27 }
 0x918   : > { %2568 = vrcp.f32 %v1547_v29  ;;  %v1559_v43 = vand.u32 2147483648, %v1547_v29  ;;  %v1557_v46 = vand.u32 2147483647, %v1547_v29  ;;  %vm1553_vm15 = vweird.f32 %v1547_v29 }
 0x919   : > { %2570 = vpow2.f32 %v1732_v58 }
 0x91a   : > { %2572 = vpow2.f32 %v1637_v39  ;;  %v1560_v28 = vor.u32 1.1754944e-38, %v1559_v43  ;;  %vm1558_vm2 = vcmp.eq.f32.partialorder %v1557_v46, 8.507059e+37 }
 0x91d   : > { %v1663_v21 = vpop.permute.xlu2 %1662 }
 0x91e   : > { %v2569_v33 = vpop.eup %2568  ;;  %v1672_v31 = vsel %vm955_vm6, %v1663_v21, 0 }
 0x91f   : > { %v1549_v35 = vmul.f32 %v2569_v33, %v1547_v29  ;;  %vm1554_vm8 = vweird.f32 %v2569_v33  ;;  %v2571_v48 = vpop.eup %2570  ;;  %v1469_v29 = vmul.f32 %v3425_v17, %v1466_v52 }
 0x920   : > { %vm1555_vm1 = vmor %vm1553_vm15, %vm1554_vm8  ;;  %v2573_v59 = vpop.eup %2572 }
 0x921   : > { %v1550_v42 = vsub.f32 1.0, %v1549_v35 }
 0x923   : > { %v1551_v45 = vmul.f32 %v2569_v33, %v1550_v42 }
 0x925   : > { %v1552_v49 = vadd.f32 %v2569_v33, %v1551_v45  ;;  %v1736_v50 = vpop.xlane.xlu1 %1735 }
 0x926   : > { %v1737_v51 = vadd.f32 %v2571_v48, %v1736_v50 }
 0x927   : > { %v1556_v53 = vsel %vm1555_vm1, %v2569_v33, %v1552_v49 }
 0x928   : > { %2574 = vrcp.f32 %v1737_v51  ;;  %v1561_v30 = vsel %vm1558_vm2, %v1560_v28, %v1556_v53  ;;  %v1749_v6 = vand.u32 2147483648, %v1737_v51  ;;  %v1747_v4 = vand.u32 2147483647, %v1737_v51 }
 0x929   : > { %v1563_v55 = vmul.f32 %v3406_v60, %v1561_v30  ;;  %v1564_v57 = vmul.f32 %v2567_v26, %v1561_v30  ;;  %vm1743_vm4 = vweird.f32 %v1737_v51 }
 0x92a   : > { %v1750_v10 = vor.u32 1.1754944e-38, %v1749_v6  ;;  %vm1748_vm8 = vcmp.eq.f32.partialorder %v1747_v4, 8.507059e+37  ;;  %v2357_v6 = vld [vmem:[%s3583_s13] sm:$0xff] }
 0x92b   : > { %v1641_v61 = vpop.xlane.xlu0 %1640  ;;  %v1565_v62 = vpack.c.bf16 %v1563_v55, %v1563_v55  ;;  %v1566_v63 = vmul.f32 %v3435_v56, %v1564_v57  ;;  %v1598_v1 = vadd.f32 %v1563_v55, %v1468_v37  ;;  %v1599_v39 = vadd.f32 %v1564_v57, %v1469_v29 }
 0x92c   : > { %v1642_v2 = vadd.f32 %v2573_v59, %v1641_v61 }
 0x92d   : > { %2303 = vmatmul.msk.bf16.vlgmr.msrb.gmra.mxu3 %vm891_vm5, %v1565_v62  ;;  %1570 = vrot.lane.b32.xlu0 %v1566_v63, %s2948_s7 }
 0x92e   : > { %v2575_v3 = vpop.eup %2574  ;;  %2576 = vrcp.f32 %v1642_v2  ;;  %v1654_v18 = vand.u32 2147483648, %v1642_v2  ;;  %v1652_v11 = vand.u32 2147483647, %v1642_v2  ;;  %vm1648_vm15 = vweird.f32 %v1642_v2 }
 0x92f   : > { %v1739_v5 = vmul.f32 %v2575_v3, %v1737_v51  ;;  %vm1744_vm3 = vweird.f32 %v2575_v3  ;;  %v1472_v51 = vmul.f32 %v3435_v56, %v1469_v29 }
 0x930   : > { %vm1745_vm7 = vmor %vm1743_vm4, %vm1744_vm3  ;;  %v1655_v24 = vor.u32 1.1754944e-38, %v1654_v18  ;;  %vm1653_vm2 = vcmp.eq.f32.partialorder %v1652_v11, 8.507059e+37 }
 0x931   : > { %v1740_v60 = vsub.f32 1.0, %v1739_v5 }
 0x933   : > { %v1741_v40 = vmul.f32 %v2575_v3, %v1740_v60  ;;  %v2358_v60 = vld [vmem:[%s3583_s13 + $0x8] sm:$0xff] }
 0x934   : > { %v2577_v54 = vpop.eup %2576  ;;  %1820 = vmatpush.bf16.msrb.mxu2 %v2358_v60 }
 0x935   : > { %v1644_v7 = vmul.f32 %v2577_v54, %v1642_v2  ;;  %v1742_v9 = vadd.f32 %v2575_v3, %v1741_v40  ;;  %vm1649_vm9 = vweird.f32 %v2577_v54 }
 0x936   : > { %vm1650_vm1 = vmor %vm1648_vm15, %vm1649_vm9 }
 0x937   : > { %v1645_v12 = vsub.f32 1.0, %v1644_v7  ;;  %v1746_v13 = vsel %vm1745_vm7, %v2575_v3, %v1742_v9  ;;  %v2517_v7 = vld [vmem:[#allocation12] ss:$0 sm:$0xff] }
 0x938   : > { %v1751_v15 = vsel %vm1748_vm8, %v1750_v10, %v1746_v13  ;;  %1821 = vmatpush.bf16.msrb.mxu2 %v2357_v6 }
 0x939   : > { %v1646_v19 = vmul.f32 %v2577_v54, %v1645_v12  ;;  %v1754_v20 = vmul.f32 %v2571_v48, %v1751_v15  ;;  %v1753_v25 = vmul.f32 %v3411_v14, %v1751_v15  ;;  %v1470_v14 = vpack.c.bf16 %v1468_v37, %v1468_v37 }
 0x93b   : > { %v1756_v22 = vmul.f32 %v3435_v56, %v1754_v20  ;;  %v1647_v23 = vadd.f32 %v2577_v54, %v1646_v19  ;;  %v1755_v41 = vpack.c.bf16 %v1753_v25, %v1753_v25 }
 0x93d   : > { %1760 = vrot.lane.b32.xlu2 %v1756_v22, %s2947_s0  ;;  %v1477_v26 = vpop.permute.xlu1 %1476  ;;  %v1651_v27 = vsel %vm1650_vm1, %v2577_v54, %v1647_v23  ;;  %s3654_s0 = sshll.u32 %s3307_s22, 3  ;;  %v2360_v22 = vld [vmem:[%s3585_s15 + $0x8] sm:$0xff]  ;;  %v2364_v23 = vld [vmem:[%s3587_s17 + $0x18] sm:$0xff] }
 0x93e   : > { %v1482_v58 = vsel %vm955_vm6, %v1477_v26, 0  ;;  %v1758_v32 = vpop.permute.xlu0 %1757  ;;  %v1656_v33 = vsel %vm1653_vm2, %v1655_v24, %v1651_v27  ;;  %s3455_s7 = scalar_lea.vmem [#allocation18], %s3654_s0  ;;  %1943 = vmatpush.bf16.msrb.mxu1 %v2364_v23  ;;  %v2363_v26 = vld [vmem:[%s3587_s17 + $0x10] sm:$0xff]  ;;  %s2007_s0 = sshll.u32 %s3315_s19, 4  ;;  %s2008_s0 = int_to_ptr.vmem [resolvable:$true] %s2007_s0 }
 0x93f   : > { %v1767_v34 = vsel %vm955_vm6, %v1758_v32, 0  ;;  %1491 = vmatpush.bf16.msrb.mxu0 %v1482_v58  ;;  %v1659_v35 = vmul.f32 %v2573_v59, %v1656_v33  ;;  %v1658_v38 = vmul.f32 %v3415_v16, %v1656_v33 }
 0x940   : > { %1776 = vmatpush.bf16.msra.mxu3 %v1767_v34 }
 0x941   : > { %v1661_v17 = vmul.f32 %v3435_v56, %v1659_v35  ;;  %v1693_v42 = vadd.f32 %v1658_v38, %v1598_v1  ;;  %v1694_v0 = vadd.f32 %v1659_v35, %v1599_v39  ;;  %v1660_v46 = vpack.c.bf16 %v1658_v38, %v1658_v38  ;;  %v2518_v35 = vld [vmem:[%s3643_s29 + $0x4] ss:$0 sm:$0xff] }
 0x942   : > { %2301 = vmatmul.msk.bf16.vlgmr.msrb.gmra.mxu0 %vm891_vm5, %v1470_v14  ;;  %1944 = vmatpush.bf16.msrb.mxu1 %v2363_v26  ;;  %v2519_v14 = vld [vmem:[%s3643_s29 + $0x5] ss:$0 sm:$0xff] }
 0x943   : > { %1681 = vmatpush.bf16.msra.mxu0 %v1672_v31  ;;  %1665 = vrot.lane.b32.xlu1 %v1661_v17, %s2952_s27  ;;  %v1788_v43 = vadd.f32 %v1753_v25, %v1693_v42  ;;  %v1789_v44 = vadd.f32 %v1754_v20, %v1694_v0  ;;  %s3655_s27 = smov 8   ;;  %v2362_v0 = vld [vmem:[%s3587_s17 + $0x8] sm:$0xff] }
 0x944   : > { %2307 = vmatmul.msk.bf16.vlgmr.msra.gmra.mxu3 %vm891_vm5, %v1755_v41 }
 0x945   : > { %v1827_v45 = vmul.f32 0.25, %v1788_v43  ;;  %v1829_v16 = vmul.f32 0.25, %v1789_v44  ;;  %v2361_v43 = vld [vmem:[%s3587_s17] sm:$0xff]  ;;  %v2520_v44 = vld [vmem:[#allocation14] ss:$0 sm:$0xff] }
 0x946   : > { %1945 = vmatpush.bf16.msrb.mxu1 %v2362_v0 }
 0x947   : > { %1828 = vst.msk [vmem:[%s3455_s7] sm:$0xff] %vm891_vm5, %v1827_v45  ;;  %1890 = vmatpush.bf16.msrb.mxu0 %v2360_v22 }
 0x948   : > { %1830 = vst.msk [vmem:[%s3455_s7] sm:$0xff] %vm1306_vm10, %v1829_v16 }
 0x94a   : > { %1946 = vmatpush.bf16.msrb.mxu1 %v2361_v43 }
 0x952   : > { %2305 = vmatmul.msk.bf16.vlgmr.msra.gmra.mxu0 %vm891_vm5, %v1660_v46 }
 0x997   : > { %v1761_v55 = vpop.permute.xlu2 %1760 }
 0x99f   : > { %v1571_v47 = vpop.permute.xlu0 %1570 }
 0x9b0   : > { %v1588_v48 = vpop.f32.mrf.mxu3 }
 0x9b1   : > { %v1589_v49 = vadd.f32 %v1588_v48, %v1571_v47 }
 0x9b3   : > { %v1592_v50 = vpack.c.bf16 %v1589_v49, %v1589_v49  ;;  %v2521_v49 = vld [vmem:[#allocation15] ss:$0 sm:$0xff] }
 0x9b5   : > { %1594 = vrot.lane.b32.xlu0 %v1592_v50, %s3655_s27  ;;  %v1666_v63 = vpop.permute.xlu1 %1665 }
 0x9b8   : > { %v1590_v28 = vpop.f32.mrf.mxu3 }
 0x9bf   : > { %v1493_v52 = vpop.f32.mrf.mxu0 }
 0x9c0   : > { %v1494_v53 = vadd.f32 %v1493_v52, %v1472_v51 }
 0x9c2   : > { %v1497_v30 = vpack.c.bf16 %v1494_v53, %v1494_v53 }
 0x9c4   : > { %1498 = vst.msk [vmem:[#allocation2] sm:$0xf] %vm973_vm11, %v1497_v30  ;;  %vm1935_vm11 = vcmask 523264  }
 0x9c7   : > { %v1778_v57 = vpop.f32.mrf.mxu3  ;;  %v1495_v59 = vpop.f32.mrf.mxu0 }
 0x9c8   : > { %v1779_v37 = vadd.f32 %v1778_v57, %v1761_v55 }
 0x9ca   : > { %v1782_v61 = vpack.c.bf16 %v1779_v37, %v1779_v37 }
 0x9cc   : > { %1784 = vrot.lane.b32.xlu2 %v1782_v61, %s3656_s14  ;;  %s2345_s14 = sshll.u32 %s3092_s3, 3 }
 0x9cd   : > { %s2005_s4 = scalar_lea.hbm %s3590_s20, %s2345_s14  ;;  %s2019_s28 = scalar_lea.hbm %s3658_s26, %s2345_s14 }
 0x9ce   : > { %s2009_s27 = sshll.u32 %s2005_s4, 4  ;;  %s2010_s27 = int_to_ptr.hbm [resolvable:$true] %s2009_s27 }
 0x9cf   : > { %v1780_v62 = vpop.f32.mrf.mxu3  ;;  %v1683_v1 = vpop.f32.mrf.mxu0  ;;  %s2836_s8 = sshra.s32 %s2010_s27, 4  ;;  %s2837_s8 = int_to_ptr.hbm [resolvable:$true] %s2836_s8 }
 0x9d0   : > { %v1684_v2 = vadd.f32 %v1683_v1, %v1666_v63  ;;  %s2838_s9 = scalar_lea.hbm %s2837_s8, 8  ;;  %p2843_p3 = scmp.lt.s32.totalorder %s2837_s8, %s3590_s20 }
 0x9d1   : > { %p2839_p0 = scmp.ne.s32.totalorder %s2837_s8, %s2838_s9 }
 0x9d2   : > { %v1687_v3 = vpack.c.bf16 %v1684_v2, %v1684_v2 }
 0x9d3   : > { %p2840_p1 = pnand %p2839_p0, %p3109_p5 }
 0x9d4   : > { %1689 = vrot.lane.b32.xlu1 %v1687_v3, %s3657_s1  ;;  %s2842_s1 = scalar_lea.hbm %s3590_s20, 16 }
 0x9d5   : > { %p2841_p2 = pneg %p2840_p1  ;;  %p2844_p4 = scmp.lt.s32.totalorder %s2842_s1, %s2838_s9 }
 0x9d7   : > { %v1685_v56 = vpop.f32.mrf.mxu0  ;;  %p2845_p7 = por %p2844_p4, %p2843_p3 }
 0x9d9   : > { %p2846_p8 = pnand %p2845_p7, %p2841_p2 }
 0xa26   : > { %v1785_v4 = vpop.permute.xlu2 %1784 }
 0xa27   : > { %v1595_v5 = vpop.permute.xlu0 %1594 }
 0xa28   : > { %1597 = vst.msk [vmem:[#allocation2] sm:$0xf] %vm1070_vm12, %v1595_v5 }
 0xa46   : > { %v1690_v40 = vpop.permute.xlu1 %1689 }
 0xa47   : > { %1692 = vst.msk [vmem:[#allocation2] sm:$0xf] %vm1166_vm13, %v1690_v40 }
 0xa48   : > { %1787 = vst.msk [vmem:[#allocation2] sm:$0xf] %vm1262_vm14, %v1785_v4 }
 0xa4f   : > { %v1790_v54 = vld [vmem:[#allocation2] sm:$0xf] }
 0xa50   : > { %2316 = vmatmul.msk.bf16.vlgmr.msrb.gmra.mxu2 %vm812_vm0, %v1790_v54 }
 0xad3   : > { %v1823_v9 = vpop.f32.mrf.mxu2 }
 0xad4   : > { %v1824_v10 = vadd.f32 %v2517_v7, %v1823_v9 }
 0xad6   : > { %v1831_v12 = vadd.f32 %v1824_v10, %v3338_v36  ;;  %v2359_v36 = vld [vmem:[%s3585_s15] sm:$0xff] }
 0xad7   : > { %1891 = vmatpush.bf16.msrb.mxu0 %v2359_v36 }
 0xad8   : > { %v1834_v13 = vsel %vm812_vm0, %v1831_v12, 0.0 }
 0xad9   : > { %1835 = vadd.xlane.f32.xlu0 %v1834_v13 }
 0xadb   : > { %v1825_v15 = vpop.f32.mrf.mxu2 }
 0xb4c   : > { %v1836_v18 = vpop.xlane.xlu0 %1835 }
 0xb4d   : > { %v1837_v19 = vmul.f32 %v1836_v18, %v3206_v8 }
 0xb4f   : > { %v1838_v20 = vsub.f32 %v1831_v12, %v1837_v19 }
 0xb51   : > { %v1839_v11 = vmul.f32 %v1838_v20, %v1838_v20 }
 0xb53   : > { %v1840_v21 = vsel %vm812_vm0, %v1839_v11, 0.0 }
 0xb54   : > { %1841 = vadd.xlane.f32.xlu1 %v1840_v21 }
 0xbc7   : > { %v1842_v24 = vpop.xlane.xlu1 %1841 }
 0xbc8   : > { %v1843_v25 = vmul.f32 %v1842_v24, %v3206_v8 }
 0xbca   : > { %v1844_v27 = vadd.f32 1e-05, %v1843_v25 }
 0xbcc   : > { %2578 = vrsqrt.f32 %v1844_v27  ;;  %vm1851_vm6 = vweird.f32 %v1844_v27 }
 0xbd2   : > { %v2579_v29 = vpop.eup %2578 }
 0xbd3   : > { %v1846_v31 = vmul.f32 %v2579_v29, %v1844_v27  ;;  %vm1852_vm5 = vweird.f32 %v2579_v29 }
 0xbd4   : > { %vm1853_vm10 = vmor %vm1851_vm6, %vm1852_vm5 }
 0xbd5   : > { %v1847_v58 = vmul.f32 %v2579_v29, %v1846_v31 }
 0xbd7   : > { %v1848_v32 = vmul.f32 0.5, %v1847_v58 }
 0xbd9   : > { %v1849_v33 = vsub.f32 1.5, %v1848_v32 }
 0xbdb   : > { %v1850_v34 = vmul.f32 %v2579_v29, %v1849_v33 }
 0xbdd   : > { %v1854_v38 = vsel %vm1853_vm10, %v2579_v29, %v1850_v34 }
 0xbde   : > { %v1855_v39 = vmul.f32 %v1854_v38, %v1838_v20 }
 0xbe0   : > { %v1857_v41 = vmul.f32 %v2518_v35, %v1855_v39 }
 0xbe2   : > { %v1859_v17 = vadd.f32 %v2519_v14, %v1857_v41 }
 0xbe4   : > { %v1860_v42 = vpack.c.bf16 %v1859_v17, %v1859_v17 }
 0xbe6   : > { %2325 = vmatmul.msk.bf16.vlgmr.msrb.gmra.mxu0 %vm812_vm0, %v1860_v42 }
 0xc63   : > { %v1893_v45 = vpop.f32.mrf.mxu0 }
 0xc64   : > { %v1894_v16 = vadd.f32 %v2520_v44, %v1893_v45 }
 0xc66   : > { %v1897_v46 = vmax.f32 %v1894_v16, 0.0 }
 0xc68   : > { %v1898_v47 = vpack.c.bf16 %v1897_v46, %v1897_v46 }
 0xc6a   : > { %2342 = vmatmul.msk.bf16.vlgmr.msrb.gmra.mxu1 %vm1935_vm11, %v1898_v47 }
 0xc6b   : > { %v1895_v48 = vpop.f32.mrf.mxu0 }
 0xce7   : > { %v1948_v50 = vpop.f32.mrf.mxu1 }
 0xce8   : > { %v1949_v28 = vadd.f32 %v2521_v49, %v1948_v50 }
 0xcea   : > { %v1952_v51 = vadd.f32 %v1949_v28, %v1831_v12 }
 0xcec   : > { %v1955_v52 = vsel %vm812_vm0, %v1952_v51, 0.0 }
 0xced   : > { %1956 = vadd.xlane.f32.xlu2 %v1955_v52 }
 0xcef   : > { %v1950_v53 = vpop.f32.mrf.mxu1 }
 0xd60   : > { %v1957_v30 = vpop.xlane.xlu2 %1956 }
 0xd61   : > { %v1958_v55 = vmul.f32 %v1957_v30, %v3206_v8 }
 0xd63   : > { %v1959_v57 = vsub.f32 %v1952_v51, %v1958_v55 }
 0xd65   : > { %v1960_v37 = vmul.f32 %v1959_v57, %v1959_v57 }
 0xd67   : > { %v1961_v59 = vsel %vm812_vm0, %v1960_v37, 0.0 }
 0xd68   : > { %1962 = vadd.xlane.f32.xlu0 %v1961_v59 }
 0xd69   : > { %2849 = shalt.err (!%p2846_p8)
}
 0xd6a   : > { %2397 = dma.vmem_to_hbm [thread:$0]  (%p3109_p5), %s2008_s0, 128, %s2010_s27, %s1987_s6  }
 0xd6b   : > { %s2021_s19 = sshll.u32 %s3455_s7, 4  ;;  %s2023_s14 = sshll.u32 %s2019_s28, 4  ;;  %s2022_s19 = int_to_ptr.vmem [resolvable:$true] %s2021_s19  ;;  %s2024_s14 = int_to_ptr.hbm [resolvable:$true] %s2023_s14 }
 0xd6c   : > { %s1992_s10 = scalar_lea.sflag [#allocation19], %s3307_s22  ;;  %s2864_s4 = sshra.s32 %s2024_s14, 4  ;;  %s2865_s4 = int_to_ptr.hbm [resolvable:$true] %s2864_s4 }
 0xd6d   : > { %s2866_s2 = scalar_lea.hbm %s2865_s4, 8  ;;  %s2870_s12 = scalar_lea.hbm %s3659_s24, 16 }
 0xd6e   : > { %p2867_p9 = scmp.ne.s32.totalorder %s2865_s4, %s2866_s2  ;;  %p2871_p12 = scmp.lt.s32.totalorder %s2865_s4, %s3659_s24 }
 0xd6f   : > { %p2872_p13 = scmp.lt.s32.totalorder %s2870_s12, %s2866_s2 }
 0xd70   : > { %p2868_p10 = pnand %p2867_p9, %p3109_p5 }
 0xd71   : > { %p2873_p0 = por %p2872_p13, %p2871_p12 }
 0xd72   : > { %p2869_p11 = pneg %p2868_p10 }
 0xd74   : > { %p2874_p1 = pnand %p2873_p0, %p2869_p11 }
 0xd76   : > { %2877 = shalt.err (!%p2874_p1)
}
 0xd77   : > { %2398 = dma.vmem_to_hbm [thread:$0]  (%p3109_p5), %s2022_s19, 128, %s2024_s14, %s1992_s10   ;;  %v2522_v6 = vld [vmem:[%s3643_s29 + $0x6] ss:$0 sm:$0xff] }
 0xd78   : > { %s3660_s27 = sld [smem:[#allocation47_spill]] }
 0xd7e   : > { %s806_s3 = scalar_lea.vmem %s3660_s27, %s3196_s23 }
 0xddb   : > { %v1963_v61 = vpop.xlane.xlu0 %1962 }
 0xddc   : > { %v1964_v62 = vmul.f32 %v1963_v61, %v3206_v8  ;;  %v2523_v8 = vld [vmem:[%s3643_s29 + $0x7] ss:$0 sm:$0xff] }
 0xdde   : > { %v1965_v63 = vadd.f32 1e-05, %v1964_v62 }
 0xde0   : > { %2580 = vrsqrt.f32 %v1965_v63  ;;  %vm1972_vm13 = vweird.f32 %v1965_v63 }
 0xde6   : > { %v2581_v1 = vpop.eup %2580 }
 0xde7   : > { %v1967_v2 = vmul.f32 %v2581_v1, %v1965_v63  ;;  %vm1973_vm12 = vweird.f32 %v2581_v1 }
 0xde8   : > { %vm1974_vm14 = vmor %vm1972_vm13, %vm1973_vm12 }
 0xde9   : > { %v1968_v3 = vmul.f32 %v2581_v1, %v1967_v2 }
 0xdeb   : > { %v1969_v56 = vmul.f32 0.5, %v1968_v3 }
 0xded   : > { %v1970_v5 = vsub.f32 1.5, %v1969_v56 }
 0xdef   : > { %v1971_v60 = vmul.f32 %v2581_v1, %v1970_v5 }
 0xdf1   : > { %v1975_v40 = vsel %vm1974_vm14, %v2581_v1, %v1971_v60 }
 0xdf2   : > { %v1976_v4 = vmul.f32 %v1975_v40, %v1959_v57 }
 0xdf4   : > { %v1978_v54 = vmul.f32 %v2522_v6, %v1976_v4 }
 0xdf6   : > { %v1980_v7 = vadd.f32 %v2523_v8, %v1978_v54 }
 0xdf8   : > { %1981 = vst.msk [vmem:[%s806_s3] sm:$0xff] %vm812_vm0, %v1980_v7 }
 0xdf9 PF: > { %s3661_s1 = sld [smem:[#allocation29_spill]] }
 0xdfa   : > { %s3662_s21 = sld [smem:[#allocation27_spill]] }
 0xdff   : > { %p2449_p5 = scmp.ge.s32.totalorder %s3661_s1, 2 }
 0xe00   : > { %s2042_s14 = sand.u32 1, %s3662_s21  }
 0xe01   : > { %p2427_p2 = pnand %p2449_p5, %p3113_p6  ;;  %s2043_s10 = scalar_lea.sflag [#allocation5], %s2042_s14 }
 0xe03   : > { %p2428_p3 = pneg %p2427_p2 }
 0xe05   : > { %2915 = dma.done.wait (%p2428_p3), %s2043_s10, 128  }
 0xe06   : > { %2917 = vsyncadd (%p2428_p3), %s2043_s10, 4294967168  ;;  %s2053_s4 = scalar_lea.sflag [#allocation19], %s2042_s14 }
 0xe07   : > { %2919 = dma.done.wait (%p2428_p3), %s2053_s4, 128  }
 0xe08   : > { %2921 = vsyncadd (%p2428_p3), %s2053_s4, 4294967168  ;;  %s3664_s27 = sld [smem:[#allocation30_spill]]  ;;  %s3667_s2 = smov %s2928_s25 }
 0xe09   : > { %s3665_s23 = sld [smem:[#allocation28_spill]] }
 0xe0a   : > { %s3666_s26 = sld [smem:[#allocation31_spill]] }
 0xe0e   : > { %p40_p4 = scmp.ge.s32.totalorder %s3664_s27, 4  }
 0xe0f   : > { %s3668_s25 = smov %s3665_s23 }
 0xe10   :  { %42 = sbr.rel (!%p40_p4) target bundleno = 27 (0x1b), region = 196 }
 0xe15   :  { %2059 = vsyncpa [#allocation4], 1 }
 0xe16   :  { %2061 = vsyncpa [#allocation4 + $0x1], 1 }
 0xe17   :  { %2062 = vsyncpa [#allocation7], 1 }
 0xe18   :  { %2063 = vsyncpa [#allocation10], 1 }
 0xe19   :  { %2064 = vsyncpa [#allocation13], 1 }
 0xe1a   :  { %2065 = vsyncpa [#allocation16], 1 }
 0xe1b   :  { %2066 = vsyncpa [#allocation5], 1 }
 0xe1c   :  { %2068 = vsyncpa [#allocation5 + $0x1], 1 }
 0xe1d   :  { %2069 = vsyncpa [#allocation19], 1 }
 0xe1e   :  { %2071 = vsyncpa [#allocation19 + $0x1], 1 }

</bundles_post_ra>
